<compile_context>
chip_gen: v7x
topology: tpu7x:2x2x1
jax: 0.10.0
libtpu: 0.0.40
codegen_flags: <defaults>
</compile_context>

<pallas_src>
import jax
import jax.numpy as jnp
from jax import lax
from jax.experimental import pallas as pl
from jax.experimental.pallas import tpu as pltpu

# ---------------- config (small, consistent with the module) ----------------
HIDDEN = 32
NUM_HEADS = 4
HEAD_DIM = HIDDEN // NUM_HEADS          # 8
NUM_LAYERS = 2
VOCAB_SIZE = 64
INTERMEDIATE = int(HIDDEN * 3.5)        # 112
MLP_PAD = 128                           # intermediate padded to a lane multiple
MLP_KR = 2 * MLP_PAD                    # merged k|r projection width (256)
EPS = 1e-5                              # layer_norm_epsilon / GroupNorm eps
HEAD_SIZE_DIVISOR = 8.0
SEQ_LEN = 8


# ------------------------------ fused Pallas kernel -------------------------
def _rwkv5_fused_kernel(
    # inputs
    pos_ref,                                       # SMEM (1,) int32 position offset
    x_ref,
    pre_g_ref, pre_b_ref, out_g_ref, out_b_ref,
    ln1_g_ref, ln1_b_ref, ln2_g_ref, ln2_b_ref,
    a_w_in_ref, a_w_out_ref, a_dec_ref, headsum_ref,
    a_lnx_g_ref, a_lnx_b_ref,
    m_w_kr_ref, m_b_kr_ref, m_w_v_ref, m_b_v_ref,
    # outputs
    o_ref,
):
    T = x_ref.shape[0]

    # first-token mask from an SMEM scalar offset + iota (no (T,1) VMEM input).
    row = lax.broadcasted_iota(jnp.int32, (T, 1), 0)
    is_first = (row + pos_ref[0]) == 0                       # (T, 1) bool

    headsum = headsum_ref[...]                               # (32, 32) block-diag ones
    inv_d = 1.0 / HEAD_DIM

    def layer_norm(xv, g, b):
        mu = jnp.mean(xv, axis=-1, keepdims=True)
        var = jnp.mean((xv - mu) ** 2, axis=-1, keepdims=True)
        return (xv - mu) * lax.rsqrt(var + EPS) * g + b

    def token_shift(xv):
        # state[t] = x[t-1]; row 0 wraps, then is zeroed where position == 0.
        return jnp.where(is_first, 0.0, pltpu.roll(xv, 1, 0))

    x = x_ref[...].astype(jnp.float32)
    x = layer_norm(x, pre_g_ref[0], pre_b_ref[0])

    for l in range(NUM_LAYERS):                              # static unroll over layers
        # ------------------------- attention -------------------------
        h = layer_norm(x, ln1_g_ref[l], ln1_b_ref[l])
        hs = jnp.concatenate([h, token_shift(h)], axis=1)               # (T, 64)
        # fused, time-mix-folded r|k|v|g projection -> lane-dense (T, 128)
        rkvg = jnp.dot(hs, a_w_in_ref[l], preferred_element_type=jnp.float32)
        r = rkvg[:, 0 * HIDDEN:1 * HIDDEN]
        k = rkvg[:, 1 * HIDDEN:2 * HIDDEN]
        v = rkvg[:, 2 * HIDDEN:3 * HIDDEN]
        g = rkvg[:, 3 * HIDDEN:4 * HIDDEN]
        g = g * jax.nn.sigmoid(g)                                        # SiLU gate

        # chunk-parallel WKV.  dec[j, t, c] = u_c (j==t), w_c^(t-1-j) (j<t), 0 (j>t),
        # already scaled by 1/head_size_divisor -- all precomputed in pack_params.
        dec = a_dec_ref[l]                                               # (T, T, 32)
        rk = (k[:, None, :] * r[None, :, :]) * dec                       # (j, t, c)
        # per-head segment sum over channels, broadcast back to lanes (one MXU pass)
        ab = jnp.dot(rk.reshape(T * T, HIDDEN), headsum,
                     preferred_element_type=jnp.float32).reshape(T, T, HIDDEN)
        out = jnp.sum(ab * v[:, None, :], axis=0)                        # (T, 32)

        # fused per-head GroupNorm (num_groups = heads), once over all rows
        mu = jnp.dot(out, headsum, preferred_element_type=jnp.float32) * inv_d
        cen = out - mu
        var = jnp.dot(cen * cen, headsum, preferred_element_type=jnp.float32) * inv_d
        xo = cen * lax.rsqrt(var + EPS) * a_lnx_g_ref[l] + a_lnx_b_ref[l]

        x = x + jnp.dot(xo * g, a_w_out_ref[l], preferred_element_type=jnp.float32)

        # ------------------------ feed-forward -----------------------
        h = layer_norm(x, ln2_g_ref[l], ln2_b_ref[l])
        hs = jnp.concatenate([h, token_shift(h)], axis=1)                # (T, 64)
        # merged k|r projection: one (8,64)x(64,256) MXU pass
        kr = jnp.dot(hs, m_w_kr_ref[l],
                     preferred_element_type=jnp.float32) + m_b_kr_ref[l]
        kk = kr[:, :MLP_PAD]
        kk = jnp.maximum(kk, 0.0)
        kk = kk * kk                                                     # relu(k)**2
        rr = kr[:, MLP_PAD:MLP_PAD + HIDDEN]
        kv = jnp.dot(kk, m_w_v_ref[l],
                     preferred_element_type=jnp.float32) + m_b_v_ref[l]
        x = x + jax.nn.sigmoid(rr) * kv

    x = layer_norm(x, out_g_ref[0], out_b_ref[0])
    # TODO(synk): at HIDDEN=32 this is a masked partial store; pad/tile to a
    #             lane-dense (multiple of 128) output slab at real model sizes.
    o_ref[...] = x.astype(o_ref.dtype)


_N_VMEM_INPUTS = 19
_fused_forward = pl.pallas_call(
    _rwkv5_fused_kernel,
    out_shape=jax.ShapeDtypeStruct((SEQ_LEN, HIDDEN), jnp.float32),
    in_specs=(
        [pl.BlockSpec(memory_space=pltpu.MemorySpace.SMEM)]
        + [pl.BlockSpec(memory_space=pltpu.MemorySpace.VMEM)] * _N_VMEM_INPUTS
    ),
    out_specs=pl.BlockSpec(memory_space=pltpu.MemorySpace.VMEM),
)


# ---------------------- one-time parameter packing ---------------------------
def pack_params(params):
    """Pre-transpose nn.Linear weights, fold time-mix coefficients into the
    projections, concatenate r/k/v/g into one 128-wide weight, merge the MLP
    k|r projections into one 256-wide weight, precompute the chunk decay tensor
    (exp(-exp(time_decay)), time_faaaa, 1/head_size_divisor) and the per-head
    segment-sum matrix, and stack per-layer tensors.  Done ONCE."""

    def fold(w, mix):
        # (x*mix + state*(1-mix)) @ w.T  ==  [x | state] @ fold(w, mix)
        wt = w.T                                                   # (in, out)
        return jnp.concatenate(
            [mix[:, None] * wt, (1.0 - mix)[:, None] * wt], axis=0)

    # block-diagonal ones: sums channels within a head, broadcasts back to lanes
    lane = jnp.arange(HIDDEN)
    headsum = (lane[:, None] // HEAD_DIM == lane[None, :] // HEAD_DIM
               ).astype(jnp.float32)                                # (32, 32)

    tt = jnp.arange(SEQ_LEN)
    jj = tt[:, None]                                                # source index j
    ti = tt[None, :]                                                # target index t
    pw = jnp.maximum(ti - 1 - jj, 0).astype(jnp.float32)            # (T, T)

    a_w_in, a_w_out, a_dec, a_lnx_g, a_lnx_b = [], [], [], [], []
    ln1_g, ln1_b, ln2_g, ln2_b = [], [], [], []
    m_w_kr, m_b_kr, m_w_v, m_b_v = [], [], [], []

    for blk in params["blocks"]:
        at, mlp = blk["attn"], blk["mlp"]
        a_w_in.append(jnp.concatenate([
            fold(at["Wr"], at["tm_r"]),
            fold(at["Wk"], at["tm_k"]),
            fold(at["Wv"], at["tm_v"]),
            fold(at["Wg"], at["tm_g"]),
        ], axis=1))                                                 # (64, 128)
        a_w_out.append(at["Wo"].T)                                  # (32, 32)

        # precomputed chunk decay tensor dec[j, t, c]
        w_flat = jnp.exp(-jnp.exp(at["time_decay"])).reshape(HIDDEN)
        u_flat = at["time_faaaa"].reshape(HIDDEN)
        decay = w_flat[None, None, :] ** pw[:, :, None]             # (T, T, 32)
        dec = jnp.where((jj < ti)[:, :, None], decay, 0.0)
        dec = jnp.where((jj == ti)[:, :, None], u_flat[None, None, :], dec)
        a_dec.append(dec * (1.0 / HEAD_SIZE_DIVISOR))

        a_lnx_g.append(at["ln_x_g"]); a_lnx_b.append(at["ln_x_b"])
        ln1_g.append(blk["ln1_g"]); ln1_b.append(blk["ln1_b"])
        ln2_g.append(blk["ln2_g"]); ln2_b.append(blk["ln2_b"])

        # merged MLP k|r projection: lanes [0,112)=k, [112,128)=0, [128,160)=r, rest 0
        wk = fold(mlp["Wk"], mlp["tm_k"])                           # (64, 112)
        wr = fold(mlp["Wr"], mlp["tm_r"])                           # (64, 32)
        w_kr = jnp.zeros((2 * HIDDEN, MLP_KR), jnp.float32)
        w_kr = w_kr.at[:, :INTERMEDIATE].set(wk)
        w_kr = w_kr.at[:, MLP_PAD:MLP_PAD + HIDDEN].set(wr)
        b_kr = jnp.zeros((MLP_KR,), jnp.float32)
        b_kr = b_kr.at[:INTERMEDIATE].set(mlp["bk"])
        b_kr = b_kr.at[MLP_PAD:MLP_PAD + HIDDEN].set(mlp["br"])
        m_w_kr.append(w_kr)
        m_b_kr.append(b_kr)
        m_w_v.append(jnp.pad(mlp["Wv"].T,
                             ((0, MLP_PAD - INTERMEDIATE), (0, 0))))  # (128, 32)
        m_b_v.append(mlp["bv"])

    stk = lambda xs: jnp.stack(xs, axis=0)
    return {
        "embed": params["embed"],
        "headsum": headsum,
        "pre_g": params["pre_ln_g"][None, :], "pre_b": params["pre_ln_b"][None, :],
        "out_g": params["ln_out_g"][None, :], "out_b": params["ln_out_b"][None, :],
        "ln1_g": stk(ln1_g), "ln1_b": stk(ln1_b),
        "ln2_g": stk(ln2_g), "ln2_b": stk(ln2_b),
        "a_w_in": stk(a_w_in), "a_w_out": stk(a_w_out), "a_dec": stk(a_dec),
        "a_lnx_g": stk(a_lnx_g), "a_lnx_b": stk(a_lnx_b),
        "m_w_kr": stk(m_w_kr), "m_b_kr": stk(m_b_kr),
        "m_w_v": stk(m_w_v), "m_b_v": stk(m_b_v),
    }


@jax.jit
def rwkv5_forward(input_ids, position_ids, packed):
    x = packed["embed"][input_ids]                                  # gather in XLA
    # TODO(synk): packed multi-sequence prefill (position resets mid-batch) would
    #             need per-row position ids; a single tile offset suffices here.
    pos0 = position_ids[:1].astype(jnp.int32)                       # (1,) SMEM scalar
    return _fused_forward(
        pos0, x,
        packed["pre_g"], packed["pre_b"], packed["out_g"], packed["out_b"],
        packed["ln1_g"], packed["ln1_b"], packed["ln2_g"], packed["ln2_b"],
        packed["a_w_in"], packed["a_w_out"], packed["a_dec"], packed["headsum"],
        packed["a_lnx_g"], packed["a_lnx_b"],
        packed["m_w_kr"], packed["m_b_kr"], packed["m_w_v"], packed["m_b_v"],
    )


# ------------------- pure-JAX reference (for a sanity check) -----------------
def _reference_forward(input_ids, position_ids, params):
    def ln(x, g, b):
        m = x.mean(-1, keepdims=True)
        v = ((x - m) ** 2).mean(-1, keepdims=True)
        return (x - m) / jnp.sqrt(v + EPS) * g + b

    def shift(x):
        st = jnp.roll(x, 1, axis=0)
        return jnp.where((position_ids == 0)[:, None], 0.0, st)

    x = params["embed"][input_ids]
    x = ln(x, params["pre_ln_g"], params["pre_ln_b"])
    T = x.shape[0]
    for blk in params["blocks"]:
        a = blk["attn"]
        h = ln(x, blk["ln1_g"], blk["ln1_b"])
        st = shift(h)
        xk = h * a["tm_k"] + st * (1 - a["tm_k"])
        xv = h * a["tm_v"] + st * (1 - a["tm_v"])
        xr = h * a["tm_r"] + st * (1 - a["tm_r"])
        xg = h * a["tm_g"] + st * (1 - a["tm_g"])
        k = xk @ a["Wk"].T; v = xv @ a["Wv"].T
        r = xr @ a["Wr"].T; g = xg @ a["Wg"].T
        g = g * jax.nn.sigmoid(g)
        r3 = r.reshape(T, NUM_HEADS, HEAD_DIM)
        k3 = k.reshape(T, NUM_HEADS, HEAD_DIM)
        v3 = v.reshape(T, NUM_HEADS, HEAD_DIM)
        u = a["time_faaaa"]
        w = jnp.exp(-jnp.exp(a["time_decay"]))
        s = jnp.zeros((NUM_HEADS, HEAD_DIM, HEAD_DIM), jnp.float32)
        outs = []
        for t in range(T):
            at = k3[t][:, :, None] * v3[t][:, None, :]
            outs.append(jnp.sum((u * r3[t])[:, :, None] * at
                                + r3[t][:, :, None] * s, axis=1))
            s = w[:, :, None] * s + at
        o = jnp.stack(outs, 0).reshape(T, HIDDEN) / HEAD_SIZE_DIVISOR
        og = o.reshape(T * NUM_HEADS, HEAD_DIM)
        m = og.mean(-1, keepdims=True)
        vv = ((og - m) ** 2).mean(-1, keepdims=True)
        o = ((og - m) / jnp.sqrt(vv + EPS)).reshape(T, HIDDEN)
        o = o * a["ln_x_g"] + a["ln_x_b"]
        x = x + (o * g) @ a["Wo"].T

        mlp = blk["mlp"]
        h = ln(x, blk["ln2_g"], blk["ln2_b"])
        st = shift(h)
        xk = h * mlp["tm_k"] + st * (1 - mlp["tm_k"])
        xr = h * mlp["tm_r"] + st * (1 - mlp["tm_r"])
        kk = jnp.maximum(xk @ mlp["Wk"].T + mlp["bk"], 0.0) ** 2
        kv = kk @ mlp["Wv"].T + mlp["bv"]
        rr = xr @ mlp["Wr"].T + mlp["br"]
        x = x + jax.nn.sigmoid(rr) * kv
    return ln(x, params["ln_out_g"], params["ln_out_b"])


# ------------------------ deterministic parameter init -----------------------
def init_params(key):
    kit = iter(jax.random.split(key, 512))

    def nrm(shape, scale=0.02):
        return scale * jax.random.normal(next(kit), shape, dtype=jnp.float32)

    def uni(shape):
        return jax.random.uniform(next(kit), shape, dtype=jnp.float32)

    params = {
        "embed": nrm((VOCAB_SIZE, HIDDEN)),
        "pre_ln_g": 1.0 + nrm((HIDDEN,)), "pre_ln_b": nrm((HIDDEN,)),
        "ln_out_g": 1.0 + nrm((HIDDEN,)), "ln_out_b": nrm((HIDDEN,)),
        "blocks": [],
    }
    for _ in range(NUM_LAYERS):
        attn = {
            "Wr": nrm((HIDDEN, HIDDEN)), "Wk": nrm((HIDDEN, HIDDEN)),
            "Wv": nrm((HIDDEN, HIDDEN)), "Wg": nrm((HIDDEN, HIDDEN)),
            "Wo": nrm((HIDDEN, HIDDEN)),
            "tm_k": uni((HIDDEN,)), "tm_v": uni((HIDDEN,)),
            "tm_r": uni((HIDDEN,)), "tm_g": uni((HIDDEN,)),
            "time_decay": nrm((NUM_HEADS, HEAD_DIM), scale=0.5),
            "time_faaaa": nrm((NUM_HEADS, HEAD_DIM), scale=0.5),
            "ln_x_g": 1.0 + nrm((HIDDEN,)), "ln_x_b": nrm((HIDDEN,)),
        }
        mlp = {
            "tm_k": uni((HIDDEN,)), "tm_r": uni((HIDDEN,)),
            "Wk": nrm((INTERMEDIATE, HIDDEN)), "bk": nrm((INTERMEDIATE,)),
            "Wv": nrm((HIDDEN, INTERMEDIATE)), "bv": nrm((HIDDEN,)),
            "Wr": nrm((HIDDEN, HIDDEN)), "br": nrm((HIDDEN,)),
        }
        params["blocks"].append({
            "ln1_g": 1.0 + nrm((HIDDEN,)), "ln1_b": nrm((HIDDEN,)),
            "ln2_g": 1.0 + nrm((HIDDEN,)), "ln2_b": nrm((HIDDEN,)),
            "attn": attn, "mlp": mlp,
        })
    return params


# ----------------------------------- main ------------------------------------
if __name__ == "__main__":
    key = jax.random.PRNGKey(0)
    pkey, ikey = jax.random.split(key)
    params = init_params(pkey)
    packed = pack_params(params)                       # one-time weight prep

    input_ids = jax.random.randint(ikey, (SEQ_LEN,), 0, VOCAB_SIZE)
    position_ids = jnp.arange(SEQ_LEN, dtype=jnp.int32)

    hidden_states = rwkv5_forward(input_ids, position_ids, packed)
    hidden_states = jax.block_until_ready(hidden_states)

    assert hidden_states.shape == (SEQ_LEN, HIDDEN)
    assert bool(jnp.all(jnp.isfinite(hidden_states)))

    # sanity check against an unfused pure-JAX reference of the torch module
    ref_out = _reference_forward(input_ids, position_ids, params)
    err = float(jnp.max(jnp.abs(hidden_states - ref_out)))
    assert err < 3e-3, f"mismatch vs reference: {err}"

    print("KERNEL_OK")
</pallas_src>

<mosaic_0001>
module attributes {stable_mosaic.version = 11 : i64} {
  func.func @_rwkv5_fused_kernel(%arg0: memref<1xi32, #tpu.memory_space<smem>>, %arg1: memref<8x32xf32, #tpu.memory_space<vmem>>, %arg2: memref<1x32xf32, #tpu.memory_space<vmem>>, %arg3: memref<1x32xf32, #tpu.memory_space<vmem>>, %arg4: memref<1x32xf32, #tpu.memory_space<vmem>>, %arg5: memref<1x32xf32, #tpu.memory_space<vmem>>, %arg6: memref<2x32xf32, #tpu.memory_space<vmem>>, %arg7: memref<2x32xf32, #tpu.memory_space<vmem>>, %arg8: memref<2x32xf32, #tpu.memory_space<vmem>>, %arg9: memref<2x32xf32, #tpu.memory_space<vmem>>, %arg10: memref<2x64x128xf32, #tpu.memory_space<vmem>>, %arg11: memref<2x32x32xf32, #tpu.memory_space<vmem>>, %arg12: memref<2x8x8x32xf32, #tpu.memory_space<vmem>>, %arg13: memref<32x32xf32, #tpu.memory_space<vmem>>, %arg14: memref<2x32xf32, #tpu.memory_space<vmem>>, %arg15: memref<2x32xf32, #tpu.memory_space<vmem>>, %arg16: memref<2x64x256xf32, #tpu.memory_space<vmem>>, %arg17: memref<2x256xf32, #tpu.memory_space<vmem>>, %arg18: memref<2x128x32xf32, #tpu.memory_space<vmem>>, %arg19: memref<2x32xf32, #tpu.memory_space<vmem>>, %arg20: memref<8x32xf32, #tpu.memory_space<vmem>>) attributes {dimension_semantics = [], scalar_prefetch = 0 : i64, scratch_operands = 0 : i64, tpu.core_type = #tpu.core_type<tc>} {
    %0 = tpu.iota {dimensions = array<i32: 0>} : vector<8x1xi32>
    %c0 = arith.constant 0 : index
    %1 = memref.load %arg0[%c0] : memref<1xi32, #tpu.memory_space<smem>>
    %2 = vector.broadcast %1 : i32 to vector<8x1xi32>
    %3 = arith.addi %0, %2 : vector<8x1xi32>
    %c0_i32 = arith.constant 0 : i32
    %4 = vector.broadcast %c0_i32 : i32 to vector<8x1xi32>
    %5 = arith.cmpi eq, %3, %4 : vector<8x1xi32>
    %c0_0 = arith.constant 0 : index
    %c0_1 = arith.constant 0 : index
    %6 = vector.load %arg13[%c0_0, %c0_1] : memref<32x32xf32, #tpu.memory_space<vmem>>, vector<32x32xf32>
    %c0_2 = arith.constant 0 : index
    %c0_3 = arith.constant 0 : index
    %7 = vector.load %arg1[%c0_2, %c0_3] : memref<8x32xf32, #tpu.memory_space<vmem>>, vector<8x32xf32>
    %c0_4 = arith.constant 0 : index
    %c0_5 = arith.constant 0 : index
    %8 = vector.load %arg2[%c0_4, %c0_5] : memref<1x32xf32, #tpu.memory_space<vmem>>, vector<1x32xf32>
    %9 = vector.shape_cast %8 : vector<1x32xf32> to vector<32xf32>
    %c0_6 = arith.constant 0 : index
    %c0_7 = arith.constant 0 : index
    %10 = vector.load %arg3[%c0_6, %c0_7] : memref<1x32xf32, #tpu.memory_space<vmem>>, vector<1x32xf32>
    %11 = vector.shape_cast %10 : vector<1x32xf32> to vector<32xf32>
    %cst = arith.constant dense<0.000000e+00> : vector<8xf32>
    %12 = vector.multi_reduction <add>, %7, %cst [1] : vector<8x32xf32> to vector<8xf32>
    %13 = vector.shape_cast %12 : vector<8xf32> to vector<8x1xf32>
    %cst_8 = arith.constant 3.200000e+01 : f32
    %14 = vector.broadcast %cst_8 : f32 to vector<8x1xf32>
    %15 = arith.divf %13, %14 : vector<8x1xf32>
    %16 = vector.broadcast %15 : vector<8x1xf32> to vector<8x32xf32>
    %17 = arith.subf %7, %16 : vector<8x32xf32>
    %18 = arith.mulf %17, %17 : vector<8x32xf32>
    %cst_9 = arith.constant dense<0.000000e+00> : vector<8xf32>
    %19 = vector.multi_reduction <add>, %18, %cst_9 [1] : vector<8x32xf32> to vector<8xf32>
    %20 = vector.shape_cast %19 : vector<8xf32> to vector<8x1xf32>
    %cst_10 = arith.constant 3.200000e+01 : f32
    %21 = vector.broadcast %cst_10 : f32 to vector<8x1xf32>
    %22 = arith.divf %20, %21 : vector<8x1xf32>
    %23 = vector.broadcast %15 : vector<8x1xf32> to vector<8x32xf32>
    %24 = arith.subf %7, %23 : vector<8x32xf32>
    %cst_11 = arith.constant 9.99999974E-6 : f32
    %25 = vector.broadcast %cst_11 : f32 to vector<8x1xf32>
    %26 = arith.addf %22, %25 : vector<8x1xf32>
    %27 = math.rsqrt %26 : vector<8x1xf32>
    %28 = vector.broadcast %27 : vector<8x1xf32> to vector<8x32xf32>
    %29 = arith.mulf %24, %28 : vector<8x32xf32>
    %30 = vector.shape_cast %9 : vector<32xf32> to vector<1x32xf32>
    %31 = vector.broadcast %30 : vector<1x32xf32> to vector<8x32xf32>
    %32 = arith.mulf %29, %31 : vector<8x32xf32>
    %33 = vector.shape_cast %11 : vector<32xf32> to vector<1x32xf32>
    %34 = vector.broadcast %33 : vector<1x32xf32> to vector<8x32xf32>
    %35 = arith.addf %32, %34 : vector<8x32xf32>
    %c0_12 = arith.constant 0 : index
    %c0_13 = arith.constant 0 : index
    %36 = vector.load %arg6[%c0_12, %c0_13] : memref<2x32xf32, #tpu.memory_space<vmem>>, vector<1x32xf32>
    %37 = vector.shape_cast %36 : vector<1x32xf32> to vector<32xf32>
    %c0_14 = arith.constant 0 : index
    %c0_15 = arith.constant 0 : index
    %38 = vector.load %arg7[%c0_14, %c0_15] : memref<2x32xf32, #tpu.memory_space<vmem>>, vector<1x32xf32>
    %39 = vector.shape_cast %38 : vector<1x32xf32> to vector<32xf32>
    %cst_16 = arith.constant dense<0.000000e+00> : vector<8xf32>
    %40 = vector.multi_reduction <add>, %35, %cst_16 [1] : vector<8x32xf32> to vector<8xf32>
    %41 = vector.shape_cast %40 : vector<8xf32> to vector<8x1xf32>
    %cst_17 = arith.constant 3.200000e+01 : f32
    %42 = vector.broadcast %cst_17 : f32 to vector<8x1xf32>
    %43 = arith.divf %41, %42 : vector<8x1xf32>
    %44 = vector.broadcast %43 : vector<8x1xf32> to vector<8x32xf32>
    %45 = arith.subf %35, %44 : vector<8x32xf32>
    %46 = arith.mulf %45, %45 : vector<8x32xf32>
    %cst_18 = arith.constant dense<0.000000e+00> : vector<8xf32>
    %47 = vector.multi_reduction <add>, %46, %cst_18 [1] : vector<8x32xf32> to vector<8xf32>
    %48 = vector.shape_cast %47 : vector<8xf32> to vector<8x1xf32>
    %cst_19 = arith.constant 3.200000e+01 : f32
    %49 = vector.broadcast %cst_19 : f32 to vector<8x1xf32>
    %50 = arith.divf %48, %49 : vector<8x1xf32>
    %51 = vector.broadcast %43 : vector<8x1xf32> to vector<8x32xf32>
    %52 = arith.subf %35, %51 : vector<8x32xf32>
    %cst_20 = arith.constant 9.99999974E-6 : f32
    %53 = vector.broadcast %cst_20 : f32 to vector<8x1xf32>
    %54 = arith.addf %50, %53 : vector<8x1xf32>
    %55 = math.rsqrt %54 : vector<8x1xf32>
    %56 = vector.broadcast %55 : vector<8x1xf32> to vector<8x32xf32>
    %57 = arith.mulf %52, %56 : vector<8x32xf32>
    %58 = vector.shape_cast %37 : vector<32xf32> to vector<1x32xf32>
    %59 = vector.broadcast %58 : vector<1x32xf32> to vector<8x32xf32>
    %60 = arith.mulf %57, %59 : vector<8x32xf32>
    %61 = vector.shape_cast %39 : vector<32xf32> to vector<1x32xf32>
    %62 = vector.broadcast %61 : vector<1x32xf32> to vector<8x32xf32>
    %63 = arith.addf %60, %62 : vector<8x32xf32>
    %c1_i32 = arith.constant 1 : i32
    %64 = tpu.dynamic_rotate %63 by %c1_i32 dim 0 : vector<8x32xf32>, i32 -> vector<8x32xf32>
    %cst_21 = arith.constant 0.000000e+00 : f32
    %65 = vector.shape_cast %5 : vector<8x1xi1> to vector<8x1xi1>
    %66 = vector.broadcast %65 : vector<8x1xi1> to vector<8x32xi1>
    %67 = vector.broadcast %cst_21 : f32 to vector<8x32xf32>
    %68 = arith.select %66, %67, %64 : vector<8x32xi1>, vector<8x32xf32>
    %69 = tpu.concatenate %63, %68 in 1 : vector<8x32xf32>, vector<8x32xf32> -> vector<8x64xf32>
    %c0_22 = arith.constant 0 : index
    %c0_23 = arith.constant 0 : index
    %c0_24 = arith.constant 0 : index
    %70 = vector.load %arg10[%c0_22, %c0_23, %c0_24] : memref<2x64x128xf32, #tpu.memory_space<vmem>>, vector<1x64x128xf32>
    %71 = vector.shape_cast %70 : vector<1x64x128xf32> to vector<64x128xf32>
    %cst_25 = arith.constant dense<0.000000e+00> : vector<8x128xf32>
    %72 = tpu.matmul %69, %71, %cst_25 {dimension_numbers = #tpu.dot_dimension_numbers<[1], [0], [0], [1], [0, 0, 1, 1], [], []>} : vector<8x64xf32>, vector<64x128xf32>, vector<8x128xf32> -> vector<8x128xf32>
    %73 = vector.extract_strided_slice %72 {offsets = [0, 0], sizes = [8, 32], strides = [1, 1]} : vector<8x128xf32> to vector<8x32xf32>
    %74 = vector.extract_strided_slice %72 {offsets = [0, 32], sizes = [8, 32], strides = [1, 1]} : vector<8x128xf32> to vector<8x32xf32>
    %75 = vector.extract_strided_slice %72 {offsets = [0, 64], sizes = [8, 32], strides = [1, 1]} : vector<8x128xf32> to vector<8x32xf32>
    %76 = vector.extract_strided_slice %72 {offsets = [0, 96], sizes = [8, 32], strides = [1, 1]} : vector<8x128xf32> to vector<8x32xf32>
    %77 = arith.negf %76 : vector<8x32xf32>
    %78 = math.exp %77 : vector<8x32xf32>
    %cst_26 = arith.constant 1.000000e+00 : f32
    %79 = vector.broadcast %cst_26 : f32 to vector<8x32xf32>
    %80 = arith.addf %79, %78 : vector<8x32xf32>
    %81 = arith.divf %79, %80 : vector<8x32xf32>
    %82 = arith.mulf %76, %81 : vector<8x32xf32>
    %c0_27 = arith.constant 0 : index
    %c0_28 = arith.constant 0 : index
    %c0_29 = arith.constant 0 : index
    %c0_30 = arith.constant 0 : index
    %83 = vector.load %arg12[%c0_27, %c0_28, %c0_29, %c0_30] : memref<2x8x8x32xf32, #tpu.memory_space<vmem>>, vector<1x8x8x32xf32>
    %84 = vector.shape_cast %83 : vector<1x8x8x32xf32> to vector<8x8x32xf32>
    %85 = vector.shape_cast %74 : vector<8x32xf32> to vector<8x1x32xf32>
    %86 = vector.shape_cast %73 : vector<8x32xf32> to vector<1x8x32xf32>
    %87 = vector.broadcast %85 : vector<8x1x32xf32> to vector<8x8x32xf32>
    %88 = vector.broadcast %86 : vector<1x8x32xf32> to vector<8x8x32xf32>
    %89 = arith.mulf %87, %88 : vector<8x8x32xf32>
    %90 = arith.mulf %89, %84 : vector<8x8x32xf32>
    %91 = vector.shape_cast %90 : vector<8x8x32xf32> to vector<64x32xf32>
    %cst_31 = arith.constant dense<0.000000e+00> : vector<64x32xf32>
    %92 = tpu.matmul %91, %6, %cst_31 {dimension_numbers = #tpu.dot_dimension_numbers<[1], [0], [0], [1], [0, 0, 1, 1], [], []>} : vector<64x32xf32>, vector<32x32xf32>, vector<64x32xf32> -> vector<64x32xf32>
    %93 = vector.shape_cast %92 : vector<64x32xf32> to vector<8x8x32xf32>
    %94 = vector.shape_cast %75 : vector<8x32xf32> to vector<8x1x32xf32>
    %95 = vector.broadcast %94 : vector<8x1x32xf32> to vector<8x8x32xf32>
    %96 = arith.mulf %93, %95 : vector<8x8x32xf32>
    %cst_32 = arith.constant dense<0.000000e+00> : vector<8x32xf32>
    %97 = vector.multi_reduction <add>, %96, %cst_32 [0] : vector<8x8x32xf32> to vector<8x32xf32>
    %cst_33 = arith.constant dense<0.000000e+00> : vector<8x32xf32>
    %98 = tpu.matmul %97, %6, %cst_33 {dimension_numbers = #tpu.dot_dimension_numbers<[1], [0], [0], [1], [0, 0, 1, 1], [], []>} : vector<8x32xf32>, vector<32x32xf32>, vector<8x32xf32> -> vector<8x32xf32>
    %cst_34 = arith.constant 1.250000e-01 : f32
    %99 = vector.broadcast %cst_34 : f32 to vector<8x32xf32>
    %100 = arith.mulf %98, %99 : vector<8x32xf32>
    %101 = arith.subf %97, %100 : vector<8x32xf32>
    %102 = arith.mulf %101, %101 : vector<8x32xf32>
    %cst_35 = arith.constant dense<0.000000e+00> : vector<8x32xf32>
    %103 = tpu.matmul %102, %6, %cst_35 {dimension_numbers = #tpu.dot_dimension_numbers<[1], [0], [0], [1], [0, 0, 1, 1], [], []>} : vector<8x32xf32>, vector<32x32xf32>, vector<8x32xf32> -> vector<8x32xf32>
    %cst_36 = arith.constant 1.250000e-01 : f32
    %104 = vector.broadcast %cst_36 : f32 to vector<8x32xf32>
    %105 = arith.mulf %103, %104 : vector<8x32xf32>
    %cst_37 = arith.constant 9.99999974E-6 : f32
    %106 = vector.broadcast %cst_37 : f32 to vector<8x32xf32>
    %107 = arith.addf %105, %106 : vector<8x32xf32>
    %108 = math.rsqrt %107 : vector<8x32xf32>
    %109 = arith.mulf %101, %108 : vector<8x32xf32>
    %c0_38 = arith.constant 0 : index
    %c0_39 = arith.constant 0 : index
    %110 = vector.load %arg14[%c0_38, %c0_39] : memref<2x32xf32, #tpu.memory_space<vmem>>, vector<1x32xf32>
    %111 = vector.shape_cast %110 : vector<1x32xf32> to vector<32xf32>
    %112 = vector.shape_cast %111 : vector<32xf32> to vector<1x32xf32>
    %113 = vector.broadcast %112 : vector<1x32xf32> to vector<8x32xf32>
    %114 = arith.mulf %109, %113 : vector<8x32xf32>
    %c0_40 = arith.constant 0 : index
    %c0_41 = arith.constant 0 : index
    %115 = vector.load %arg15[%c0_40, %c0_41] : memref<2x32xf32, #tpu.memory_space<vmem>>, vector<1x32xf32>
    %116 = vector.shape_cast %115 : vector<1x32xf32> to vector<32xf32>
    %117 = vector.shape_cast %116 : vector<32xf32> to vector<1x32xf32>
    %118 = vector.broadcast %117 : vector<1x32xf32> to vector<8x32xf32>
    %119 = arith.addf %114, %118 : vector<8x32xf32>
    %120 = arith.mulf %119, %82 : vector<8x32xf32>
    %c0_42 = arith.constant 0 : index
    %c0_43 = arith.constant 0 : index
    %c0_44 = arith.constant 0 : index
    %121 = vector.load %arg11[%c0_42, %c0_43, %c0_44] : memref<2x32x32xf32, #tpu.memory_space<vmem>>, vector<1x32x32xf32>
    %122 = vector.shape_cast %121 : vector<1x32x32xf32> to vector<32x32xf32>
    %cst_45 = arith.constant dense<0.000000e+00> : vector<8x32xf32>
    %123 = tpu.matmul %120, %122, %cst_45 {dimension_numbers = #tpu.dot_dimension_numbers<[1], [0], [0], [1], [0, 0, 1, 1], [], []>} : vector<8x32xf32>, vector<32x32xf32>, vector<8x32xf32> -> vector<8x32xf32>
    %124 = arith.addf %35, %123 : vector<8x32xf32>
    %c0_46 = arith.constant 0 : index
    %c0_47 = arith.constant 0 : index
    %125 = vector.load %arg8[%c0_46, %c0_47] : memref<2x32xf32, #tpu.memory_space<vmem>>, vector<1x32xf32>
    %126 = vector.shape_cast %125 : vector<1x32xf32> to vector<32xf32>
    %c0_48 = arith.constant 0 : index
    %c0_49 = arith.constant 0 : index
    %127 = vector.load %arg9[%c0_48, %c0_49] : memref<2x32xf32, #tpu.memory_space<vmem>>, vector<1x32xf32>
    %128 = vector.shape_cast %127 : vector<1x32xf32> to vector<32xf32>
    %cst_50 = arith.constant dense<0.000000e+00> : vector<8xf32>
    %129 = vector.multi_reduction <add>, %124, %cst_50 [1] : vector<8x32xf32> to vector<8xf32>
    %130 = vector.shape_cast %129 : vector<8xf32> to vector<8x1xf32>
    %cst_51 = arith.constant 3.200000e+01 : f32
    %131 = vector.broadcast %cst_51 : f32 to vector<8x1xf32>
    %132 = arith.divf %130, %131 : vector<8x1xf32>
    %133 = vector.broadcast %132 : vector<8x1xf32> to vector<8x32xf32>
    %134 = arith.subf %124, %133 : vector<8x32xf32>
    %135 = arith.mulf %134, %134 : vector<8x32xf32>
    %cst_52 = arith.constant dense<0.000000e+00> : vector<8xf32>
    %136 = vector.multi_reduction <add>, %135, %cst_52 [1] : vector<8x32xf32> to vector<8xf32>
    %137 = vector.shape_cast %136 : vector<8xf32> to vector<8x1xf32>
    %cst_53 = arith.constant 3.200000e+01 : f32
    %138 = vector.broadcast %cst_53 : f32 to vector<8x1xf32>
    %139 = arith.divf %137, %138 : vector<8x1xf32>
    %140 = vector.broadcast %132 : vector<8x1xf32> to vector<8x32xf32>
    %141 = arith.subf %124, %140 : vector<8x32xf32>
    %cst_54 = arith.constant 9.99999974E-6 : f32
    %142 = vector.broadcast %cst_54 : f32 to vector<8x1xf32>
    %143 = arith.addf %139, %142 : vector<8x1xf32>
    %144 = math.rsqrt %143 : vector<8x1xf32>
    %145 = vector.broadcast %144 : vector<8x1xf32> to vector<8x32xf32>
    %146 = arith.mulf %141, %145 : vector<8x32xf32>
    %147 = vector.shape_cast %126 : vector<32xf32> to vector<1x32xf32>
    %148 = vector.broadcast %147 : vector<1x32xf32> to vector<8x32xf32>
    %149 = arith.mulf %146, %148 : vector<8x32xf32>
    %150 = vector.shape_cast %128 : vector<32xf32> to vector<1x32xf32>
    %151 = vector.broadcast %150 : vector<1x32xf32> to vector<8x32xf32>
    %152 = arith.addf %149, %151 : vector<8x32xf32>
    %c1_i32_55 = arith.constant 1 : i32
    %153 = tpu.dynamic_rotate %152 by %c1_i32_55 dim 0 : vector<8x32xf32>, i32 -> vector<8x32xf32>
    %cst_56 = arith.constant 0.000000e+00 : f32
    %154 = vector.shape_cast %5 : vector<8x1xi1> to vector<8x1xi1>
    %155 = vector.broadcast %154 : vector<8x1xi1> to vector<8x32xi1>
    %156 = vector.broadcast %cst_56 : f32 to vector<8x32xf32>
    %157 = arith.select %155, %156, %153 : vector<8x32xi1>, vector<8x32xf32>
    %158 = tpu.concatenate %152, %157 in 1 : vector<8x32xf32>, vector<8x32xf32> -> vector<8x64xf32>
    %c0_57 = arith.constant 0 : index
    %c0_58 = arith.constant 0 : index
    %c0_59 = arith.constant 0 : index
    %159 = vector.load %arg16[%c0_57, %c0_58, %c0_59] : memref<2x64x256xf32, #tpu.memory_space<vmem>>, vector<1x64x256xf32>
    %160 = vector.shape_cast %159 : vector<1x64x256xf32> to vector<64x256xf32>
    %cst_60 = arith.constant dense<0.000000e+00> : vector<8x256xf32>
    %161 = tpu.matmul %158, %160, %cst_60 {dimension_numbers = #tpu.dot_dimension_numbers<[1], [0], [0], [1], [0, 0, 1, 1], [], []>} : vector<8x64xf32>, vector<64x256xf32>, vector<8x256xf32> -> vector<8x256xf32>
    %c0_61 = arith.constant 0 : index
    %c0_62 = arith.constant 0 : index
    %162 = vector.load %arg17[%c0_61, %c0_62] : memref<2x256xf32, #tpu.memory_space<vmem>>, vector<1x256xf32>
    %163 = vector.shape_cast %162 : vector<1x256xf32> to vector<256xf32>
    %164 = vector.shape_cast %163 : vector<256xf32> to vector<1x256xf32>
    %165 = vector.broadcast %164 : vector<1x256xf32> to vector<8x256xf32>
    %166 = arith.addf %161, %165 : vector<8x256xf32>
    %167 = vector.extract_strided_slice %166 {offsets = [0, 0], sizes = [8, 128], strides = [1, 1]} : vector<8x256xf32> to vector<8x128xf32>
    %cst_63 = arith.constant 0.000000e+00 : f32
    %168 = vector.broadcast %cst_63 : f32 to vector<8x128xf32>
    %169 = arith.maximumf %167, %168 : vector<8x128xf32>
    %170 = arith.mulf %169, %169 : vector<8x128xf32>
    %171 = vector.extract_strided_slice %166 {offsets = [0, 128], sizes = [8, 32], strides = [1, 1]} : vector<8x256xf32> to vector<8x32xf32>
    %c0_64 = arith.constant 0 : index
    %c0_65 = arith.constant 0 : index
    %c0_66 = arith.constant 0 : index
    %172 = vector.load %arg18[%c0_64, %c0_65, %c0_66] : memref<2x128x32xf32, #tpu.memory_space<vmem>>, vector<1x128x32xf32>
    %173 = vector.shape_cast %172 : vector<1x128x32xf32> to vector<128x32xf32>
    %cst_67 = arith.constant dense<0.000000e+00> : vector<8x32xf32>
    %174 = tpu.matmul %170, %173, %cst_67 {dimension_numbers = #tpu.dot_dimension_numbers<[1], [0], [0], [1], [0, 0, 1, 1], [], []>} : vector<8x128xf32>, vector<128x32xf32>, vector<8x32xf32> -> vector<8x32xf32>
    %c0_68 = arith.constant 0 : index
    %c0_69 = arith.constant 0 : index
    %175 = vector.load %arg19[%c0_68, %c0_69] : memref<2x32xf32, #tpu.memory_space<vmem>>, vector<1x32xf32>
    %176 = vector.shape_cast %175 : vector<1x32xf32> to vector<32xf32>
    %177 = vector.shape_cast %176 : vector<32xf32> to vector<1x32xf32>
    %178 = vector.broadcast %177 : vector<1x32xf32> to vector<8x32xf32>
    %179 = arith.addf %174, %178 : vector<8x32xf32>
    %180 = arith.negf %171 : vector<8x32xf32>
    %181 = math.exp %180 : vector<8x32xf32>
    %cst_70 = arith.constant 1.000000e+00 : f32
    %182 = vector.broadcast %cst_70 : f32 to vector<8x32xf32>
    %183 = arith.addf %182, %181 : vector<8x32xf32>
    %184 = arith.divf %182, %183 : vector<8x32xf32>
    %185 = arith.mulf %184, %179 : vector<8x32xf32>
    %186 = arith.addf %124, %185 : vector<8x32xf32>
    %c1 = arith.constant 1 : index
    %c0_71 = arith.constant 0 : index
    %187 = vector.load %arg6[%c1, %c0_71] : memref<2x32xf32, #tpu.memory_space<vmem>>, vector<1x32xf32>
    %188 = vector.shape_cast %187 : vector<1x32xf32> to vector<32xf32>
    %c1_72 = arith.constant 1 : index
    %c0_73 = arith.constant 0 : index
    %189 = vector.load %arg7[%c1_72, %c0_73] : memref<2x32xf32, #tpu.memory_space<vmem>>, vector<1x32xf32>
    %190 = vector.shape_cast %189 : vector<1x32xf32> to vector<32xf32>
    %cst_74 = arith.constant dense<0.000000e+00> : vector<8xf32>
    %191 = vector.multi_reduction <add>, %186, %cst_74 [1] : vector<8x32xf32> to vector<8xf32>
    %192 = vector.shape_cast %191 : vector<8xf32> to vector<8x1xf32>
    %cst_75 = arith.constant 3.200000e+01 : f32
    %193 = vector.broadcast %cst_75 : f32 to vector<8x1xf32>
    %194 = arith.divf %192, %193 : vector<8x1xf32>
    %195 = vector.broadcast %194 : vector<8x1xf32> to vector<8x32xf32>
    %196 = arith.subf %186, %195 : vector<8x32xf32>
    %197 = arith.mulf %196, %196 : vector<8x32xf32>
    %cst_76 = arith.constant dense<0.000000e+00> : vector<8xf32>
    %198 = vector.multi_reduction <add>, %197, %cst_76 [1] : vector<8x32xf32> to vector<8xf32>
    %199 = vector.shape_cast %198 : vector<8xf32> to vector<8x1xf32>
    %cst_77 = arith.constant 3.200000e+01 : f32
    %200 = vector.broadcast %cst_77 : f32 to vector<8x1xf32>
    %201 = arith.divf %199, %200 : vector<8x1xf32>
    %202 = vector.broadcast %194 : vector<8x1xf32> to vector<8x32xf32>
    %203 = arith.subf %186, %202 : vector<8x32xf32>
    %cst_78 = arith.constant 9.99999974E-6 : f32
    %204 = vector.broadcast %cst_78 : f32 to vector<8x1xf32>
    %205 = arith.addf %201, %204 : vector<8x1xf32>
    %206 = math.rsqrt %205 : vector<8x1xf32>
    %207 = vector.broadcast %206 : vector<8x1xf32> to vector<8x32xf32>
    %208 = arith.mulf %203, %207 : vector<8x32xf32>
    %209 = vector.shape_cast %188 : vector<32xf32> to vector<1x32xf32>
    %210 = vector.broadcast %209 : vector<1x32xf32> to vector<8x32xf32>
    %211 = arith.mulf %208, %210 : vector<8x32xf32>
    %212 = vector.shape_cast %190 : vector<32xf32> to vector<1x32xf32>
    %213 = vector.broadcast %212 : vector<1x32xf32> to vector<8x32xf32>
    %214 = arith.addf %211, %213 : vector<8x32xf32>
    %c1_i32_79 = arith.constant 1 : i32
    %215 = tpu.dynamic_rotate %214 by %c1_i32_79 dim 0 : vector<8x32xf32>, i32 -> vector<8x32xf32>
    %cst_80 = arith.constant 0.000000e+00 : f32
    %216 = vector.shape_cast %5 : vector<8x1xi1> to vector<8x1xi1>
    %217 = vector.broadcast %216 : vector<8x1xi1> to vector<8x32xi1>
    %218 = vector.broadcast %cst_80 : f32 to vector<8x32xf32>
    %219 = arith.select %217, %218, %215 : vector<8x32xi1>, vector<8x32xf32>
    %220 = tpu.concatenate %214, %219 in 1 : vector<8x32xf32>, vector<8x32xf32> -> vector<8x64xf32>
    %c1_81 = arith.constant 1 : index
    %c0_82 = arith.constant 0 : index
    %c0_83 = arith.constant 0 : index
    %221 = vector.load %arg10[%c1_81, %c0_82, %c0_83] : memref<2x64x128xf32, #tpu.memory_space<vmem>>, vector<1x64x128xf32>
    %222 = vector.shape_cast %221 : vector<1x64x128xf32> to vector<64x128xf32>
    %cst_84 = arith.constant dense<0.000000e+00> : vector<8x128xf32>
    %223 = tpu.matmul %220, %222, %cst_84 {dimension_numbers = #tpu.dot_dimension_numbers<[1], [0], [0], [1], [0, 0, 1, 1], [], []>} : vector<8x64xf32>, vector<64x128xf32>, vector<8x128xf32> -> vector<8x128xf32>
    %224 = vector.extract_strided_slice %223 {offsets = [0, 0], sizes = [8, 32], strides = [1, 1]} : vector<8x128xf32> to vector<8x32xf32>
    %225 = vector.extract_strided_slice %223 {offsets = [0, 32], sizes = [8, 32], strides = [1, 1]} : vector<8x128xf32> to vector<8x32xf32>
    %226 = vector.extract_strided_slice %223 {offsets = [0, 64], sizes = [8, 32], strides = [1, 1]} : vector<8x128xf32> to vector<8x32xf32>
    %227 = vector.extract_strided_slice %223 {offsets = [0, 96], sizes = [8, 32], strides = [1, 1]} : vector<8x128xf32> to vector<8x32xf32>
    %228 = arith.negf %227 : vector<8x32xf32>
    %229 = math.exp %228 : vector<8x32xf32>
    %cst_85 = arith.constant 1.000000e+00 : f32
    %230 = vector.broadcast %cst_85 : f32 to vector<8x32xf32>
    %231 = arith.addf %230, %229 : vector<8x32xf32>
    %232 = arith.divf %230, %231 : vector<8x32xf32>
    %233 = arith.mulf %227, %232 : vector<8x32xf32>
    %c1_86 = arith.constant 1 : index
    %c0_87 = arith.constant 0 : index
    %c0_88 = arith.constant 0 : index
    %c0_89 = arith.constant 0 : index
    %234 = vector.load %arg12[%c1_86, %c0_87, %c0_88, %c0_89] : memref<2x8x8x32xf32, #tpu.memory_space<vmem>>, vector<1x8x8x32xf32>
    %235 = vector.shape_cast %234 : vector<1x8x8x32xf32> to vector<8x8x32xf32>
    %236 = vector.shape_cast %225 : vector<8x32xf32> to vector<8x1x32xf32>
    %237 = vector.shape_cast %224 : vector<8x32xf32> to vector<1x8x32xf32>
    %238 = vector.broadcast %236 : vector<8x1x32xf32> to vector<8x8x32xf32>
    %239 = vector.broadcast %237 : vector<1x8x32xf32> to vector<8x8x32xf32>
    %240 = arith.mulf %238, %239 : vector<8x8x32xf32>
    %241 = arith.mulf %240, %235 : vector<8x8x32xf32>
    %242 = vector.shape_cast %241 : vector<8x8x32xf32> to vector<64x32xf32>
    %cst_90 = arith.constant dense<0.000000e+00> : vector<64x32xf32>
    %243 = tpu.matmul %242, %6, %cst_90 {dimension_numbers = #tpu.dot_dimension_numbers<[1], [0], [0], [1], [0, 0, 1, 1], [], []>} : vector<64x32xf32>, vector<32x32xf32>, vector<64x32xf32> -> vector<64x32xf32>
    %244 = vector.shape_cast %243 : vector<64x32xf32> to vector<8x8x32xf32>
    %245 = vector.shape_cast %226 : vector<8x32xf32> to vector<8x1x32xf32>
    %246 = vector.broadcast %245 : vector<8x1x32xf32> to vector<8x8x32xf32>
    %247 = arith.mulf %244, %246 : vector<8x8x32xf32>
    %cst_91 = arith.constant dense<0.000000e+00> : vector<8x32xf32>
    %248 = vector.multi_reduction <add>, %247, %cst_91 [0] : vector<8x8x32xf32> to vector<8x32xf32>
    %cst_92 = arith.constant dense<0.000000e+00> : vector<8x32xf32>
    %249 = tpu.matmul %248, %6, %cst_92 {dimension_numbers = #tpu.dot_dimension_numbers<[1], [0], [0], [1], [0, 0, 1, 1], [], []>} : vector<8x32xf32>, vector<32x32xf32>, vector<8x32xf32> -> vector<8x32xf32>
    %cst_93 = arith.constant 1.250000e-01 : f32
    %250 = vector.broadcast %cst_93 : f32 to vector<8x32xf32>
    %251 = arith.mulf %249, %250 : vector<8x32xf32>
    %252 = arith.subf %248, %251 : vector<8x32xf32>
    %253 = arith.mulf %252, %252 : vector<8x32xf32>
    %cst_94 = arith.constant dense<0.000000e+00> : vector<8x32xf32>
    %254 = tpu.matmul %253, %6, %cst_94 {dimension_numbers = #tpu.dot_dimension_numbers<[1], [0], [0], [1], [0, 0, 1, 1], [], []>} : vector<8x32xf32>, vector<32x32xf32>, vector<8x32xf32> -> vector<8x32xf32>
    %cst_95 = arith.constant 1.250000e-01 : f32
    %255 = vector.broadcast %cst_95 : f32 to vector<8x32xf32>
    %256 = arith.mulf %254, %255 : vector<8x32xf32>
    %cst_96 = arith.constant 9.99999974E-6 : f32
    %257 = vector.broadcast %cst_96 : f32 to vector<8x32xf32>
    %258 = arith.addf %256, %257 : vector<8x32xf32>
    %259 = math.rsqrt %258 : vector<8x32xf32>
    %260 = arith.mulf %252, %259 : vector<8x32xf32>
    %c1_97 = arith.constant 1 : index
    %c0_98 = arith.constant 0 : index
    %261 = vector.load %arg14[%c1_97, %c0_98] : memref<2x32xf32, #tpu.memory_space<vmem>>, vector<1x32xf32>
    %262 = vector.shape_cast %261 : vector<1x32xf32> to vector<32xf32>
    %263 = vector.shape_cast %262 : vector<32xf32> to vector<1x32xf32>
    %264 = vector.broadcast %263 : vector<1x32xf32> to vector<8x32xf32>
    %265 = arith.mulf %260, %264 : vector<8x32xf32>
    %c1_99 = arith.constant 1 : index
    %c0_100 = arith.constant 0 : index
    %266 = vector.load %arg15[%c1_99, %c0_100] : memref<2x32xf32, #tpu.memory_space<vmem>>, vector<1x32xf32>
    %267 = vector.shape_cast %266 : vector<1x32xf32> to vector<32xf32>
    %268 = vector.shape_cast %267 : vector<32xf32> to vector<1x32xf32>
    %269 = vector.broadcast %268 : vector<1x32xf32> to vector<8x32xf32>
    %270 = arith.addf %265, %269 : vector<8x32xf32>
    %271 = arith.mulf %270, %233 : vector<8x32xf32>
    %c1_101 = arith.constant 1 : index
    %c0_102 = arith.constant 0 : index
    %c0_103 = arith.constant 0 : index
    %272 = vector.load %arg11[%c1_101, %c0_102, %c0_103] : memref<2x32x32xf32, #tpu.memory_space<vmem>>, vector<1x32x32xf32>
    %273 = vector.shape_cast %272 : vector<1x32x32xf32> to vector<32x32xf32>
    %cst_104 = arith.constant dense<0.000000e+00> : vector<8x32xf32>
    %274 = tpu.matmul %271, %273, %cst_104 {dimension_numbers = #tpu.dot_dimension_numbers<[1], [0], [0], [1], [0, 0, 1, 1], [], []>} : vector<8x32xf32>, vector<32x32xf32>, vector<8x32xf32> -> vector<8x32xf32>
    %275 = arith.addf %186, %274 : vector<8x32xf32>
    %c1_105 = arith.constant 1 : index
    %c0_106 = arith.constant 0 : index
    %276 = vector.load %arg8[%c1_105, %c0_106] : memref<2x32xf32, #tpu.memory_space<vmem>>, vector<1x32xf32>
    %277 = vector.shape_cast %276 : vector<1x32xf32> to vector<32xf32>
    %c1_107 = arith.constant 1 : index
    %c0_108 = arith.constant 0 : index
    %278 = vector.load %arg9[%c1_107, %c0_108] : memref<2x32xf32, #tpu.memory_space<vmem>>, vector<1x32xf32>
    %279 = vector.shape_cast %278 : vector<1x32xf32> to vector<32xf32>
    %cst_109 = arith.constant dense<0.000000e+00> : vector<8xf32>
    %280 = vector.multi_reduction <add>, %275, %cst_109 [1] : vector<8x32xf32> to vector<8xf32>
    %281 = vector.shape_cast %280 : vector<8xf32> to vector<8x1xf32>
    %cst_110 = arith.constant 3.200000e+01 : f32
    %282 = vector.broadcast %cst_110 : f32 to vector<8x1xf32>
    %283 = arith.divf %281, %282 : vector<8x1xf32>
    %284 = vector.broadcast %283 : vector<8x1xf32> to vector<8x32xf32>
    %285 = arith.subf %275, %284 : vector<8x32xf32>
    %286 = arith.mulf %285, %285 : vector<8x32xf32>
    %cst_111 = arith.constant dense<0.000000e+00> : vector<8xf32>
    %287 = vector.multi_reduction <add>, %286, %cst_111 [1] : vector<8x32xf32> to vector<8xf32>
    %288 = vector.shape_cast %287 : vector<8xf32> to vector<8x1xf32>
    %cst_112 = arith.constant 3.200000e+01 : f32
    %289 = vector.broadcast %cst_112 : f32 to vector<8x1xf32>
    %290 = arith.divf %288, %289 : vector<8x1xf32>
    %291 = vector.broadcast %283 : vector<8x1xf32> to vector<8x32xf32>
    %292 = arith.subf %275, %291 : vector<8x32xf32>
    %cst_113 = arith.constant 9.99999974E-6 : f32
    %293 = vector.broadcast %cst_113 : f32 to vector<8x1xf32>
    %294 = arith.addf %290, %293 : vector<8x1xf32>
    %295 = math.rsqrt %294 : vector<8x1xf32>
    %296 = vector.broadcast %295 : vector<8x1xf32> to vector<8x32xf32>
    %297 = arith.mulf %292, %296 : vector<8x32xf32>
    %298 = vector.shape_cast %277 : vector<32xf32> to vector<1x32xf32>
    %299 = vector.broadcast %298 : vector<1x32xf32> to vector<8x32xf32>
    %300 = arith.mulf %297, %299 : vector<8x32xf32>
    %301 = vector.shape_cast %279 : vector<32xf32> to vector<1x32xf32>
    %302 = vector.broadcast %301 : vector<1x32xf32> to vector<8x32xf32>
    %303 = arith.addf %300, %302 : vector<8x32xf32>
    %c1_i32_114 = arith.constant 1 : i32
    %304 = tpu.dynamic_rotate %303 by %c1_i32_114 dim 0 : vector<8x32xf32>, i32 -> vector<8x32xf32>
    %cst_115 = arith.constant 0.000000e+00 : f32
    %305 = vector.shape_cast %5 : vector<8x1xi1> to vector<8x1xi1>
    %306 = vector.broadcast %305 : vector<8x1xi1> to vector<8x32xi1>
    %307 = vector.broadcast %cst_115 : f32 to vector<8x32xf32>
    %308 = arith.select %306, %307, %304 : vector<8x32xi1>, vector<8x32xf32>
    %309 = tpu.concatenate %303, %308 in 1 : vector<8x32xf32>, vector<8x32xf32> -> vector<8x64xf32>
    %c1_116 = arith.constant 1 : index
    %c0_117 = arith.constant 0 : index
    %c0_118 = arith.constant 0 : index
    %310 = vector.load %arg16[%c1_116, %c0_117, %c0_118] : memref<2x64x256xf32, #tpu.memory_space<vmem>>, vector<1x64x256xf32>
    %311 = vector.shape_cast %310 : vector<1x64x256xf32> to vector<64x256xf32>
    %cst_119 = arith.constant dense<0.000000e+00> : vector<8x256xf32>
    %312 = tpu.matmul %309, %311, %cst_119 {dimension_numbers = #tpu.dot_dimension_numbers<[1], [0], [0], [1], [0, 0, 1, 1], [], []>} : vector<8x64xf32>, vector<64x256xf32>, vector<8x256xf32> -> vector<8x256xf32>
    %c1_120 = arith.constant 1 : index
    %c0_121 = arith.constant 0 : index
    %313 = vector.load %arg17[%c1_120, %c0_121] : memref<2x256xf32, #tpu.memory_space<vmem>>, vector<1x256xf32>
    %314 = vector.shape_cast %313 : vector<1x256xf32> to vector<256xf32>
    %315 = vector.shape_cast %314 : vector<256xf32> to vector<1x256xf32>
    %316 = vector.broadcast %315 : vector<1x256xf32> to vector<8x256xf32>
    %317 = arith.addf %312, %316 : vector<8x256xf32>
    %318 = vector.extract_strided_slice %317 {offsets = [0, 0], sizes = [8, 128], strides = [1, 1]} : vector<8x256xf32> to vector<8x128xf32>
    %cst_122 = arith.constant 0.000000e+00 : f32
    %319 = vector.broadcast %cst_122 : f32 to vector<8x128xf32>
    %320 = arith.maximumf %318, %319 : vector<8x128xf32>
    %321 = arith.mulf %320, %320 : vector<8x128xf32>
    %322 = vector.extract_strided_slice %317 {offsets = [0, 128], sizes = [8, 32], strides = [1, 1]} : vector<8x256xf32> to vector<8x32xf32>
    %c1_123 = arith.constant 1 : index
    %c0_124 = arith.constant 0 : index
    %c0_125 = arith.constant 0 : index
    %323 = vector.load %arg18[%c1_123, %c0_124, %c0_125] : memref<2x128x32xf32, #tpu.memory_space<vmem>>, vector<1x128x32xf32>
    %324 = vector.shape_cast %323 : vector<1x128x32xf32> to vector<128x32xf32>
    %cst_126 = arith.constant dense<0.000000e+00> : vector<8x32xf32>
    %325 = tpu.matmul %321, %324, %cst_126 {dimension_numbers = #tpu.dot_dimension_numbers<[1], [0], [0], [1], [0, 0, 1, 1], [], []>} : vector<8x128xf32>, vector<128x32xf32>, vector<8x32xf32> -> vector<8x32xf32>
    %c1_127 = arith.constant 1 : index
    %c0_128 = arith.constant 0 : index
    %326 = vector.load %arg19[%c1_127, %c0_128] : memref<2x32xf32, #tpu.memory_space<vmem>>, vector<1x32xf32>
    %327 = vector.shape_cast %326 : vector<1x32xf32> to vector<32xf32>
    %328 = vector.shape_cast %327 : vector<32xf32> to vector<1x32xf32>
    %329 = vector.broadcast %328 : vector<1x32xf32> to vector<8x32xf32>
    %330 = arith.addf %325, %329 : vector<8x32xf32>
    %331 = arith.negf %322 : vector<8x32xf32>
    %332 = math.exp %331 : vector<8x32xf32>
    %cst_129 = arith.constant 1.000000e+00 : f32
    %333 = vector.broadcast %cst_129 : f32 to vector<8x32xf32>
    %334 = arith.addf %333, %332 : vector<8x32xf32>
    %335 = arith.divf %333, %334 : vector<8x32xf32>
    %336 = arith.mulf %335, %330 : vector<8x32xf32>
    %337 = arith.addf %275, %336 : vector<8x32xf32>
    %c0_130 = arith.constant 0 : index
    %c0_131 = arith.constant 0 : index
    %338 = vector.load %arg4[%c0_130, %c0_131] : memref<1x32xf32, #tpu.memory_space<vmem>>, vector<1x32xf32>
    %339 = vector.shape_cast %338 : vector<1x32xf32> to vector<32xf32>
    %c0_132 = arith.constant 0 : index
    %c0_133 = arith.constant 0 : index
    %340 = vector.load %arg5[%c0_132, %c0_133] : memref<1x32xf32, #tpu.memory_space<vmem>>, vector<1x32xf32>
    %341 = vector.shape_cast %340 : vector<1x32xf32> to vector<32xf32>
    %cst_134 = arith.constant dense<0.000000e+00> : vector<8xf32>
    %342 = vector.multi_reduction <add>, %337, %cst_134 [1] : vector<8x32xf32> to vector<8xf32>
    %343 = vector.shape_cast %342 : vector<8xf32> to vector<8x1xf32>
    %cst_135 = arith.constant 3.200000e+01 : f32
    %344 = vector.broadcast %cst_135 : f32 to vector<8x1xf32>
    %345 = arith.divf %343, %344 : vector<8x1xf32>
    %346 = vector.broadcast %345 : vector<8x1xf32> to vector<8x32xf32>
    %347 = arith.subf %337, %346 : vector<8x32xf32>
    %348 = arith.mulf %347, %347 : vector<8x32xf32>
    %cst_136 = arith.constant dense<0.000000e+00> : vector<8xf32>
    %349 = vector.multi_reduction <add>, %348, %cst_136 [1] : vector<8x32xf32> to vector<8xf32>
    %350 = vector.shape_cast %349 : vector<8xf32> to vector<8x1xf32>
    %cst_137 = arith.constant 3.200000e+01 : f32
    %351 = vector.broadcast %cst_137 : f32 to vector<8x1xf32>
    %352 = arith.divf %350, %351 : vector<8x1xf32>
    %353 = vector.broadcast %345 : vector<8x1xf32> to vector<8x32xf32>
    %354 = arith.subf %337, %353 : vector<8x32xf32>
    %cst_138 = arith.constant 9.99999974E-6 : f32
    %355 = vector.broadcast %cst_138 : f32 to vector<8x1xf32>
    %356 = arith.addf %352, %355 : vector<8x1xf32>
    %357 = math.rsqrt %356 : vector<8x1xf32>
    %358 = vector.broadcast %357 : vector<8x1xf32> to vector<8x32xf32>
    %359 = arith.mulf %354, %358 : vector<8x32xf32>
    %360 = vector.shape_cast %339 : vector<32xf32> to vector<1x32xf32>
    %361 = vector.broadcast %360 : vector<1x32xf32> to vector<8x32xf32>
    %362 = arith.mulf %359, %361 : vector<8x32xf32>
    %363 = vector.shape_cast %341 : vector<32xf32> to vector<1x32xf32>
    %364 = vector.broadcast %363 : vector<1x32xf32> to vector<8x32xf32>
    %365 = arith.addf %362, %364 : vector<8x32xf32>
    %c0_139 = arith.constant 0 : index
    %c0_140 = arith.constant 0 : index
    %366 = vector.load %arg20[%c0_139, %c0_140] : memref<8x32xf32, #tpu.memory_space<vmem>>, vector<8x32xf32>
    tpu.vector_store %arg20[%c0_139, %c0_140], %365 {strides = array<i32>} : memref<8x32xf32, #tpu.memory_space<vmem>>, vector<8x32xf32>,
    return
  }
}

</mosaic_0001>

<bundles_post_ra>
// kernel: rwkv5_forward.1
= control target key start
LH: loop header
LB: loop body
LE: loop exit
PB: predicated region body
PF: predicated region fallthrough
CT: control target
= control target key end

     0   :  { %s3661_s0 = inlined_call_operand.<no memory space> [shape: s32[1], index: 0, kind: input, shape index: {}]   ;;  %s3662_s1 = inlined_call_operand.vmem [shape: f32[8,32], index: 1, kind: input, shape index: {}]   ;;  %s3663_s2 = inlined_call_operand.vmem [shape: f32[1,32], index: 2, kind: input, shape index: {}]   ;;  %s3664_s3 = inlined_call_operand.vmem [shape: f32[1,32], index: 3, kind: input, shape index: {}]   ;;  %s3665_s4 = inlined_call_operand.vmem [shape: f32[1,32], index: 4, kind: input, shape index: {}]   ;;  %s3666_s5 = inlined_call_operand.vmem [shape: f32[1,32], index: 5, kind: input, shape index: {}]   ;;  %s3667_s6 = inlined_call_operand.vmem [shape: f32[2,32], index: 6, kind: input, shape index: {}]   ;;  %s3668_s7 = inlined_call_operand.vmem [shape: f32[2,32], index: 7, kind: input, shape index: {}]   ;;  %s3669_s8 = inlined_call_operand.vmem [shape: f32[2,32], index: 8, kind: input, shape index: {}]   ;;  %s3670_s9 = inlined_call_operand.vmem [shape: f32[2,32], index: 9, kind: input, shape index: {}]   ;;  %s3671_s10 = inlined_call_operand.vmem [shape: f32[2,64,128], index: 10, kind: input, shape index: {}]   ;;  %s3672_s11 = inlined_call_operand.hbm [shape: f32[2,32,32], index: 11, kind: input, shape index: {}]   ;;  %s3673_s12 = inlined_call_operand.vmem [shape: f32[2,8,8,32], index: 12, kind: input, shape index: {}]   ;;  %s3674_s13 = inlined_call_operand.hbm [shape: f32[32,32], index: 13, kind: input, shape index: {}]   ;;  %s3675_s14 = inlined_call_operand.hbm [shape: f32[2,32], index: 14, kind: input, shape index: {}]   ;;  %s3676_s15 = inlined_call_operand.hbm [shape: f32[2,32], index: 15, kind: input, shape index: {}]   ;;  %s3677_s16 = inlined_call_operand.vmem [shape: f32[2,64,256], index: 16, kind: input, shape index: {}]   ;;  %s3678_s17 = inlined_call_operand.vmem [shape: f32[2,256], index: 17, kind: input, shape index: {}]   ;;  %s3679_s18 = inlined_call_operand.vmem [shape: f32[2,128,32], index: 18, kind: input, shape index: {}]   ;;  %s3680_s19 = inlined_call_operand.vmem [shape: f32[2,32], index: 19, kind: input, shape index: {}]   ;;  %s3681_s20 = inlined_call_operand.hbm [shape: f32[8,32], index: 20, kind: output, shape index: {}]  }
   0x1   :  { %3682 = sst [smem:[#allocation16_spill]] %s3661_s0 }
   0x2   :  { %3683 = sst [smem:[#allocation17_spill]] %s3662_s1 }
   0x3   :  { %3684 = sst [smem:[#allocation18_spill]] %s3663_s2 }
   0x4   :  { %3685 = sst [smem:[#allocation19_spill]] %s3664_s3 }
   0x5   :  { %3686 = sst [smem:[#allocation20_spill]] %s3665_s4 }
   0x6   :  { %26 = vsyncpa [#allocation4], 0 }
   0x7   :  { %27 = vsyncpa [#allocation7], 0 }
   0x8   :  { %28 = vsyncpa [#allocation10], 0 }
   0x9   :  { %29 = vsyncpa [#allocation5], 0  ;;  %s2845_s1 = smov [#allocation6]   ;;  %s2846_s23 = smov [#allocation3]  }
   0xa   :  { %s71_s22 = sshll.u32 %s2845_s1, 4  ;;  %s57_s24 = sshll.u32 %s2846_s23, 4  ;;  %s72_s22 = int_to_ptr.vmem [resolvable:$true] %s71_s22  ;;  %s2964_s24 = int_to_ptr.vmem [resolvable:$true] %s57_s24 }
   0xb   :  { %s2727_s3 = scalar_lea.hbm %s3674_s13, 512 }
   0xc   :  { %p2728_p0 = scmp.ne.s32.totalorder %s3674_s13, %s2727_s3  ;;  %p2731_p1 = scmp.lt.u32.totalorder %s2727_s3, %s3674_s13 }
   0xe   :  { %p2733_p2 = pnand %p2731_p1, %p2728_p0 }
  0x10   :  { %2736 = shalt.err (!%p2733_p2)
}
  0x11   :  { %s2737_s29 = scalar_lea.vmem %s72_s22, 512  ;;  %p2742_p4 = scmp.lt.s32.totalorder %s72_s22, %s72_s22 }
  0x12   :  { %p2738_p3 = scmp.ne.s32.totalorder %s72_s22, %s2737_s29  ;;  %p2743_p5 = scmp.lt.s32.totalorder %s2737_s29, %s2737_s29 }
  0x14   :  { %p2744_p6 = por %p2743_p5, %p2742_p4 }
  0x16   :  { %p2745_p7 = pnand %p2744_p6, %p2738_p3 }
  0x18   :  { %2748 = shalt.err (!%p2745_p7)
}
  0x19   :  { %s2847_s30 = smov 128   ;;  %s2848_s0 = smov 8  }
  0x1a   :  { %77 = dma.hbm_to_vmem [thread:$0]  %s3674_s13, 512, %s72_s22, [#allocation7], %s2847_s30, %s2847_s30, %s2848_s0  }
  0x1b   :  { %s2749_s25 = scalar_lea.hbm %s3672_s11, 1024 }
  0x1c   :  { %p2750_p8 = scmp.ne.s32.totalorder %s3672_s11, %s2749_s25  ;;  %p2753_p9 = scmp.lt.u32.totalorder %s2749_s25, %s3672_s11 }
  0x1e   :  { %p2755_p10 = pnand %p2753_p9, %p2750_p8 }
  0x20   :  { %2758 = shalt.err (!%p2755_p10)
}
  0x21   :  { %s2759_s4 = scalar_lea.vmem %s2964_s24, 1024  ;;  %p2764_p12 = scmp.lt.s32.totalorder %s2964_s24, %s2964_s24 }
  0x22   :  { %p2760_p11 = scmp.ne.s32.totalorder %s2964_s24, %s2759_s4  ;;  %p2765_p13 = scmp.lt.s32.totalorder %s2759_s4, %s2759_s4 }
  0x24   :  { %p2766_p0 = por %p2765_p13, %p2764_p12 }
  0x26   :  { %p2767_p1 = pnand %p2766_p0, %p2760_p11 }
  0x28   :  { %2770 = shalt.err (!%p2767_p1)
}
  0x29   :  { %63 = dma.hbm_to_vmem [thread:$0]  %s3672_s11, 1024, %s2964_s24, [#allocation4], %s2847_s30, %s2847_s30, %s2848_s0  }
  0x2a   :  { %s2849_s29 = smov [#allocation8]   ;;  %s2850_s1 = smov [#allocation9]  }
  0x2b   :  { %s84_s21 = sshll.u32 %s2849_s29, 4  ;;  %s94_s23 = sshll.u32 %s2850_s1, 4  ;;  %s85_s21 = int_to_ptr.vmem [resolvable:$true] %s84_s21  ;;  %s95_s23 = int_to_ptr.vmem [resolvable:$true] %s94_s23 }
  0x2c   :  { %s2771_s3 = scalar_lea.hbm %s3675_s14, 32 }
  0x2d   :  { %p2772_p2 = scmp.ne.s32.totalorder %s3675_s14, %s2771_s3  ;;  %p2775_p3 = scmp.lt.u32.totalorder %s2771_s3, %s3675_s14 }
  0x2f   :  { %p2777_p4 = pnand %p2775_p3, %p2772_p2 }
  0x31   :  { %2780 = shalt.err (!%p2777_p4)
}
  0x32   :  { %s2781_s11 = scalar_lea.vmem %s85_s21, 32  ;;  %p2786_p6 = scmp.lt.s32.totalorder %s85_s21, %s85_s21 }
  0x33   :  { %p2782_p5 = scmp.ne.s32.totalorder %s85_s21, %s2781_s11  ;;  %p2787_p7 = scmp.lt.s32.totalorder %s2781_s11, %s2781_s11 }
  0x35   :  { %p2788_p8 = por %p2787_p7, %p2786_p6 }
  0x37   :  { %p2789_p9 = pnand %p2788_p8, %p2782_p5 }
  0x39   :  { %2792 = shalt.err (!%p2789_p9)
}
  0x3a   :  { %87 = dma.hbm_to_vmem [thread:$0]  %s3675_s14, 32, %s85_s21, [#allocation7]  }
  0x3b   :  { %s2793_s22 = scalar_lea.hbm %s3676_s15, 32 }
  0x3c   :  { %p2794_p10 = scmp.ne.s32.totalorder %s3676_s15, %s2793_s22  ;;  %p2797_p11 = scmp.lt.u32.totalorder %s2793_s22, %s3676_s15 }
  0x3e   :  { %p2799_p12 = pnand %p2797_p11, %p2794_p10 }
  0x40   :  { %2802 = shalt.err (!%p2799_p12)
}
  0x41   :  { %s2803_s3 = scalar_lea.vmem %s95_s23, 32  ;;  %p2808_p0 = scmp.lt.s32.totalorder %s95_s23, %s95_s23 }
  0x42   :  { %p2804_p13 = scmp.ne.s32.totalorder %s95_s23, %s2803_s3  ;;  %p2809_p1 = scmp.lt.s32.totalorder %s2803_s3, %s2803_s3 }
  0x44   :  { %p2810_p2 = por %p2809_p1, %p2808_p0 }
  0x46   :  { %p2811_p3 = pnand %p2810_p2, %p2804_p13 }
  0x48   :  { %2814 = shalt.err (!%p2811_p3)
}
  0x49   :  { %97 = dma.hbm_to_vmem [thread:$0]  %s3676_s15, 32, %s95_s23, [#allocation10]  }
  0x4a   :  { %2837 = dma.done.wait [#allocation4], 1024  }
  0x4b   :  { %2838 = vsyncadd [#allocation4], 4294966272 }
  0x4c   :  { %2839 = dma.done.wait [#allocation7], 544  }
  0x4d   :  { %2840 = vsyncadd [#allocation7], 4294966752 }
  0x4e   :  { %2841 = dma.done.wait [#allocation10], 32  }
  0x4f   :  { %2842 = vsyncadd [#allocation10], 4294967264  ;;  %vm131_vm0 = vcmask 261120   ;;  %s3687_s28 = sld [smem:[#allocation17_spill]]  ;;  %s3688_s4 = sld [smem:[#allocation18_spill]]  ;;  %v194_v22 = vld [vmem:[%s3671_s10] sm:$0xff]  ;;  %v118_v38 = vlaneseq }
  0x50   :  { %s3689_s30 = sld [smem:[#allocation19_spill]]  ;;  %v195_v23 = vld [vmem:[%s3671_s10 + $0x8] sm:$0xff]  ;;  %v196_v24 = vld [vmem:[%s3671_s10 + $0x10] sm:$0xff]  ;;  %v2851_v25 = vmov 0.0|0.0   ;;  %v197_v27 = vld [vmem:[%s3671_s10 + $0x18] sm:$0xff]  ;;  %vm2852_vm1 = vmmov 0  }
  0x51   :  { %2521 = vmatprep.subr.bf16.mxu0 %v2851_v25  ;;  %v2522_v26 = vpack.c.bf16 %v195_v23, %v194_v22  ;;  %v2525_v28 = vpack.c.bf16 %v197_v27, %v196_v24  ;;  %v198_v29 = vld [vmem:[%s3671_s10 + $0x20] sm:$0xff]  ;;  %v199_v30 = vld [vmem:[%s3671_s10 + $0x28] sm:$0xff]  ;;  %v200_v32 = vld [vmem:[%s3671_s10 + $0x30] sm:$0xff]  ;;  %v2853_v39 = vmov 0.0   ;;  %v3066_v40 = vshrl.u32 %v118_v38, 7  ;;  %s3690_s13 = sld [smem:[#allocation16_spill]] }
  0x52   :  { %v2528_v31 = vpack.c.bf16 %v199_v30, %v198_v29  ;;  %v201_v33 = vld [vmem:[%s3671_s10 + $0x38] sm:$0xff]  ;;  %2323 = vmatprep.mubr.msk.f32.mxu0 %vm2852_vm1, %v2853_v39  ;;  %v283_v41 = vld [vmem:[%s3673_s12] sm:$0xff]  ;;  %s2854_s22 = smov 32   ;;  %v285_v52 = vld [vmem:[%s3673_s12 + $0x10] sm:$0xff]  ;;  %vm202_vm3 = vcmask 523264   ;;  %s2856_s29 = smov 96  }
  0x53   :  { %2523 = vmatpush3.bf16.msra.mxu0 %v2522_v26  ;;  %v2531_v34 = vpack.c.bf16 %v201_v33, %v200_v32  ;;  %v2106_v44 = vld [vmem:[%s3667_s6] ss:$0 sm:$0xff]  ;;  %v289_v56 = vld [vmem:[%s3673_s12 + $0x30] sm:$0xff]  ;;  %v284_v59 = vld [vmem:[%s3673_s12 + $0x8] sm:$0xff]  ;;  %s2857_s1 = smov 64  }
  0x54   :  { %2524 = vmatprep.subr.bf16.mxu0 %v2851_v25  ;;  %v2107_v47 = vld [vmem:[%s3668_s7] ss:$0 sm:$0xff]  ;;  %v286_v60 = vld [vmem:[%s3673_s12 + $0x18] sm:$0xff]  ;;  %v288_v61 = vld [vmem:[%s3673_s12 + $0x28] sm:$0xff] }
  0x55   :  { %v128_v0 = vld [vmem:[%s3687_s28] sm:$0xff]  ;;  %v290_v62 = vld [vmem:[%s3673_s12 + $0x38] sm:$0xff] }
  0x56   :  { %v132_v1 = vsel %vm131_vm0, %v128_v0, 0.0  ;;  %v2104_v11 = vld [vmem:[%s3688_s4] ss:$0 sm:$0xff] }
  0x57   :  { %133 = vadd.xlane.f32.xlu0 %v132_v1  ;;  %v2105_v13 = vld [vmem:[%s3689_s30] ss:$0 sm:$0xff]  ;;  %2526 = vmatpush3.bf16.msra.mxu0 %v2525_v28  ;;  %v121_v42 = vstv %s3690_s13  ;;  %v126_v1 = vld [vmem:[#allocation6 + $0x10] sm:$0xff] }
  0x58   :  { %2527 = vmatprep.subr.bf16.mxu0 %v2851_v25  ;;  %v3079_v46 = vadd.s32 %v121_v42, %v3066_v40  ;;  %v287_v53 = vld [vmem:[%s3673_s12 + $0x20] sm:$0xff] }
  0x59   :  { %v124_v63 = vld [vmem:[#allocation6] sm:$0xff] }
  0x5a   :  { %vm123_vm2 = vcmp.eq.s32.totalorder %v3079_v46, 0  ;;  %v2191_v46 = vld [vmem:[%s3679_s18 + $0xd0] sm:$0xff] }
  0x5b   :  { %2529 = vmatpush3.bf16.msra.mxu0 %v2528_v31 }
  0x5c   :  { %2530 = vmatprep.subr.bf16.mxu0 %v2851_v25 }
  0x5f   :  { %2532 = vmatpush3.bf16.msra.mxu0 %v2531_v34 }
  0xe4   :  { %v134_v2 = vpop.xlane.xlu0 %133 }
  0xe5   :  { %v136_v3 = vmul.f32 0.03125, %v134_v2 }
  0xe7   :  { %v137_v4 = vsub.f32 %v128_v0, %v136_v3  ;;  %v125_v0 = vld [vmem:[#allocation6 + $0x8] sm:$0xff]  ;;  %v127_v3 = vld [vmem:[#allocation6 + $0x18] sm:$0xff] }
  0xe8   :  { %v3122_v2 = vpack.c.bf16 %v125_v0, %v124_v63 }
  0xe9   :  { %v138_v5 = vmul.f32 %v137_v4, %v137_v4 }
  0xea   :  { %2534 = vmatprep.subr.bf16.mxu0 %v3122_v2  ;;  %2677 = vmatprep.subr.bf16.mxu1 %v3122_v2 }
  0xeb   :  { %v139_v6 = vsel %vm131_vm0, %v138_v5, 0.0  ;;  %2679 = vmatpush3.bf16.msra.mxu1 %v3122_v2  ;;  %v2855_v5 = vmov 1966171168  }
  0xec   :  { %140 = vadd.xlane.f32.xlu0 %v139_v6  ;;  %v294_v6 = vunpack.c.l.s4 %v2855_v5 }
 0x179   :  { %v141_v7 = vpop.xlane.xlu0 %140 }
 0x17a   :  { %v142_v8 = vmul.f32 0.03125, %v141_v7  ;;  %v295_v7 = vunpack.c.0.s8 %v294_v6 }
 0x17c   :  { %v143_v9 = vadd.f32 1e-05, %v142_v8  ;;  %v3137_v8 = vsub.s32 %v295_v7, %v3066_v40 }
 0x17e   :  { %2695 = vrsqrt.f32 %v143_v9 }
 0x188   :  { %v2696_v10 = vpop.eup %2695 }
 0x189   :  { %v145_v12 = vmul.f32 %v2696_v10, %v137_v4  ;;  %v3124_v4 = vpack.c.bf16 %v127_v3, %v126_v1 }
 0x18b   :  { %v152_v14 = vmul.f32 %v2104_v11, %v145_v12  ;;  %2678 = vmatprep.subr.bf16.mxu1 %v3124_v4 }
 0x18c   :  { %2680 = vmatpush3.bf16.msra.mxu1 %v3124_v4 }
 0x18d   :  { %v3030_v15 = vadd.f32 %v2105_v13, %v152_v14  ;;  %2547 = vmatprep.subr.bf16.mxu1 %v2851_v25  ;;  %v3145_v14 = vsub.s32 0, %v3066_v40 }
 0x18f   :  { %v162_v16 = vsel %vm131_vm0, %v3030_v15, 0.0 }
 0x190   :  { %163 = vadd.xlane.f32.xlu1 %v162_v16 }
 0x21d   :  { %v164_v17 = vpop.xlane.xlu1 %163 }
 0x21e   :  { %v165_v18 = vmul.f32 0.03125, %v164_v17 }
 0x220   :  { %v166_v19 = vsub.f32 %v3030_v15, %v165_v18 }
 0x222   :  { %v167_v20 = vmul.f32 %v166_v19, %v166_v19 }
 0x224   :  { %v168_v21 = vsel %vm131_vm0, %v167_v20, 0.0 }
 0x225   :  { %169 = vadd.xlane.f32.xlu1 %v168_v21 }
 0x236   :  { %400 = vrot.lane.b32.xlu1 %v283_v41, %s2854_s22 }
 0x2b2   :  { %v170_v35 = vpop.xlane.xlu1 %169 }
 0x2b3   :  { %v171_v36 = vmul.f32 0.03125, %v170_v35 }
 0x2b5   :  { %v172_v37 = vadd.f32 1e-05, %v171_v36 }
 0x2b6   :  { %v401_v13 = vpop.permute.xlu1 %400 }
 0x2b7   :  { %2697 = vrsqrt.f32 %v172_v37 }
 0x2c1   :  { %v2698_v43 = vpop.eup %2697 }
 0x2c2   :  { %v174_v45 = vmul.f32 %v2698_v43, %v166_v19 }
 0x2c4   :  { %v179_v48 = vmul.f32 %v2106_v44, %v174_v45 }
 0x2c6   :  { %v184_v49 = vadd.f32 %v2107_v47, %v179_v48 }
 0x2c8   :  { %v185_v50 = vrot.slane %v184_v49, 7 }
 0x2ca   :  { %v188_v51 = vsel %vm123_vm2, 0.0, %v185_v50 }
 0x2cb   :  { %190 = vrot.lane.b32.xlu0 %v188_v51, %s2854_s22 }
 0x2cf   :  { %404 = vrot.lane.b32.xlu0 %v285_v52, %s2854_s22 }
 0x2d3   :  { %408 = vrot.lane.b32.xlu0 %v287_v53, %s2854_s22 }
 0x2d7   :  { %412 = vrot.lane.b32.xlu0 %v289_v56, %s2854_s22 }
 0x33d   :  { %v191_v54 = vpop.permute.xlu0 %190 }
 0x33e   :  { %v193_v55 = vsel %vm131_vm0, %v184_v49, %v191_v54 }
 0x33f   :  { %2324 = vmatmul.mubr.msk.f32.vlgmr.msra.gmra.mrb[0].mxu0 %vm202_vm3, %v193_v55 }
 0x340   :  { %2536 = vmatpush3.bf16.msra.mxu0 %v3122_v2 }
 0x341   :  { %2538 = vmatprep.subr.bf16.mxu0 %v3124_v4  ;;  %v405_v21 = vpop.permute.xlu0 %404 }
 0x344   :  { %2540 = vmatpush3.bf16.msra.mxu0 %v3124_v4 }
 0x345   :  { %2541 = vmatprep.subr.bf16.mxu0 %v2851_v25  ;;  %v409_v41 = vpop.permute.xlu0 %408 }
 0x349   :  { %v413_v54 = vpop.permute.xlu0 %412 }
 0x412   :  { %v3102_v57 = vpop.f32.mrb[0].mxu0 }
 0x413   :  { %381 = vrot.lane.b32.xlu1 %v3102_v57, %s2854_s22  ;;  %v2325_v58 = vpop.f32.mrb[1].mxu0  ;;  %v299_v9 = vrot.slane %v3102_v57, %v3137_v8  ;;  %v292_v10 = vcombine.high %v3102_v57, %v3102_v57  ;;  %v2109_v20 = vmul.f32 -1.442695, %v3102_v57 }
 0x415   :  { %v307_v11 = vcombine.high %v299_v9, %v299_v9  ;;  %v315_v12 = vrot.slane %v299_v9, %v3137_v8  ;;  %v306_v16 = vrot.slane %v292_v10, %v3137_v8  ;;  %2699 = vpow2.f32 %v2109_v20 }
 0x417   :  { %402 = vrot.lane.b32.xlu1 %v284_v59, %s2854_s22  ;;  %v329_v17 = vrot.slane %v307_v11, %v3137_v8  ;;  %v337_v18 = vcombine.high %v315_v12, %v315_v12  ;;  %v344_v19 = vrot.slane %v315_v12, %v3145_v14  ;;  %v322_v23 = vrot.slane %v306_v16, %v3137_v8 }
 0x418   :  { %v308_v24 = vcombine.high %v306_v16, %v306_v16 }
 0x419   :  { %v348_v26 = vrot.slane %v329_v17, %v3145_v14  ;;  %v339_v28 = vcombine.high %v329_v17, %v329_v17  ;;  %v352_v29 = vrot.slane %v337_v18, %v3145_v14  ;;  %v338_v33 = vcombine.high %v322_v23, %v322_v23 }
 0x41a   :  { %v336_v37 = vrot.slane %v308_v24, %v3137_v8  ;;  %v360_v38 = vrot.slane %v322_v23, %v3145_v14 }
 0x41b   :  { %406 = vrot.lane.b32.xlu1 %v286_v60, %s2854_s22  ;;  %v356_v36 = vrot.slane %v339_v28, %v3145_v14  ;;  %v368_v47 = vrot.slane %v338_v33, %v3145_v14 }
 0x41c   :  { %v364_v49 = vrot.slane %v336_v37, %v3145_v14  ;;  %v340_v50 = vcombine.high %v336_v37, %v336_v37 }
 0x41e   :  { %v372_v58 = vrot.slane %v340_v50, %v3145_v14 }
 0x41f   :  { %410 = vrot.lane.b32.xlu1 %v288_v61, %s2854_s22  ;;  %v2700_v59 = vpop.eup %2699 }
 0x420   :  { %v279_v0 = vadd.f32 1.0, %v2700_v59 }
 0x422   :  { %2701 = vrcp.f32 %v279_v0  ;;  %v794_v0 = vld [vmem:[#allocation3] sm:$0xff] }
 0x423   :  { %414 = vrot.lane.b32.xlu1 %v290_v62, %s2854_s22 }
 0x42c   :  { %v2702_v1 = vpop.eup %2701 }
 0x42d   :  { %v282_v3 = vmul.f32 %v2702_v1, %v3102_v57  ;;  %v795_v1 = vld [vmem:[#allocation3 + $0x8] sm:$0xff] }
 0x485   :  { %v382_v22 = vpop.permute.xlu1 %381 }
 0x486   :  { %v384_v27 = vmul.f32 %v382_v22, %v344_v19  ;;  %v385_v30 = vmul.f32 %v382_v22, %v348_v26  ;;  %v386_v32 = vmul.f32 %v382_v22, %v352_v29  ;;  %v387_v42 = vmul.f32 %v382_v22, %v356_v36 }
 0x487   :  { %v388_v44 = vmul.f32 %v382_v22, %v360_v38  ;;  %v390_v51 = vmul.f32 %v382_v22, %v368_v47  ;;  %v389_v52 = vmul.f32 %v382_v22, %v364_v49  ;;  %v391_v61 = vmul.f32 %v382_v22, %v372_v58 }
 0x488   :  { %v424_v31 = vmul.f32 %v401_v13, %v384_v27  ;;  %v426_v43 = vmul.f32 %v405_v21, %v386_v32 }
 0x489   :  { %v403_v34 = vpop.permute.xlu1 %402  ;;  %v428_v53 = vmul.f32 %v409_v41, %v388_v44  ;;  %v430_v60 = vmul.f32 %v413_v54, %v390_v51 }
 0x48a   :  { %v425_v35 = vmul.f32 %v403_v34, %v385_v30  ;;  %440 = vrot.lane.b32.xlu0 %v424_v31, %s2856_s29 }
 0x48c   :  { %442 = vrot.lane.b32.xlu1 %v425_v35, %s2856_s29 }
 0x48d   :  { %v407_v45 = vpop.permute.xlu1 %406 }
 0x48e   :  { %v427_v48 = vmul.f32 %v407_v45, %v387_v42  ;;  %444 = vrot.lane.b32.xlu0 %v426_v43, %s2856_s29 }
 0x490   :  { %446 = vrot.lane.b32.xlu1 %v427_v48, %s2856_s29 }
 0x491   :  { %v411_v55 = vpop.permute.xlu1 %410 }
 0x492   :  { %v429_v56 = vmul.f32 %v411_v55, %v389_v52  ;;  %448 = vrot.lane.b32.xlu0 %v428_v53, %s2856_s29 }
 0x494   :  { %450 = vrot.lane.b32.xlu1 %v429_v56, %s2856_s29 }
 0x495   :  { %v415_v62 = vpop.permute.xlu1 %414 }
 0x496   :  { %v431_v63 = vmul.f32 %v415_v62, %v391_v61  ;;  %452 = vrot.lane.b32.xlu0 %v430_v60, %s2856_s29 }
 0x498   :  { %454 = vrot.lane.b32.xlu1 %v431_v63, %s2856_s29 }
 0x49a   :  { %577 = vrot.lane.b32.xlu0 %v344_v19, %s2857_s1 }
 0x49c   :  { %579 = vrot.lane.b32.xlu1 %v348_v26, %s2857_s1 }
 0x49e   :  { %581 = vrot.lane.b32.xlu0 %v352_v29, %s2857_s1 }
 0x4a0   :  { %583 = vrot.lane.b32.xlu1 %v356_v36, %s2857_s1 }
 0x4a2   :  { %585 = vrot.lane.b32.xlu0 %v360_v38, %s2857_s1 }
 0x4a4   :  { %587 = vrot.lane.b32.xlu1 %v364_v49, %s2857_s1 }
 0x4a6   :  { %589 = vrot.lane.b32.xlu0 %v368_v47, %s2857_s1 }
 0x4a8   :  { %591 = vrot.lane.b32.xlu1 %v372_v58, %s2857_s1 }
 0x4aa   :  { %790 = vrot.lane.b32.xlu0 %v282_v3, %s2854_s22  ;;  %v2554_v3 = vpack.c.bf16 %v795_v1, %v794_v0  ;;  %v1010_v0 = vld [vmem:[%s3679_s18 + $0x10] sm:$0xff] }
 0x4fc   :  { %v441_v5 = vpop.permute.xlu0 %440 }
 0x4fd   :  { %2334 = vmatprep.mubr.msk.f32.mxu0 %vm131_vm0, %v441_v5  ;;  %v796_v5 = vld [vmem:[#allocation3 + $0x10] sm:$0xff] }
 0x4fe   :  { %v443_v6 = vpop.permute.xlu1 %442 }
 0x4ff   :  { %2335 = vmatmul.mubr.msk.f32.vlgmr.msra.gmra.mrb[2].mxu0 %vm131_vm0, %v443_v6  ;;  %v797_v6 = vld [vmem:[#allocation3 + $0x18] sm:$0xff] }
 0x500   :  { %v445_v7 = vpop.permute.xlu0 %444  ;;  %2543 = vmatpush3.bf16.msra.mxu0 %v3122_v2 }
 0x501   :  { %2337 = vmatprep.mubr.msk.f32.mxu0 %vm131_vm0, %v445_v7  ;;  %2544 = vmatprep.subr.bf16.mxu0 %v2851_v25  ;;  %v2557_v7 = vpack.c.bf16 %v797_v6, %v796_v5  ;;  %v2123_v6 = vld [vmem:[%s3669_s8] ss:$0 sm:$0xff] }
 0x502   :  { %v447_v9 = vpop.permute.xlu1 %446 }
 0x503   :  { %2338 = vmatmul.mubr.msk.f32.gmra.mrb[4].mxu0 %vm131_vm0, %v447_v9 }
 0x504   :  { %v449_v10 = vpop.permute.xlu0 %448  ;;  %2546 = vmatpush3.bf16.msra.mxu0 %v3124_v4  ;;  %2354 = vmatprep.mubr.msk.f32.mxu0 %vm2852_vm1, %v2853_v39 }
 0x505   :  { %2340 = vmatprep.mubr.msk.f32.mxu1 %vm131_vm0, %v449_v10  ;;  %2553 = vmatprep.subr.bf16.mxu0 %v2851_v25 }
 0x506   :  { %v451_v57 = vpop.permute.xlu1 %450 }
 0x507   :  { %2341 = vmatmul.mubr.msk.f32.vlgmr.msra.gmra.mrb[0].mxu1 %vm131_vm0, %v451_v57 }
 0x508   :  { %v453_v11 = vpop.permute.xlu0 %452  ;;  %2549 = vmatpush3.bf16.msra.mxu1 %v3122_v2 }
 0x509   :  { %2343 = vmatprep.mubr.msk.f32.mxu1 %vm131_vm0, %v453_v11  ;;  %2550 = vmatprep.subr.bf16.mxu1 %v2851_v25 }
 0x50a   :  { %v455_v12 = vpop.permute.xlu1 %454 }
 0x50b   :  { %2344 = vmatmul.mubr.msk.f32.gmra.mrb[2].mxu1 %vm131_vm0, %v455_v12 }
 0x50c   :  { %2552 = vmatpush3.bf16.msra.mxu1 %v3124_v4  ;;  %2365 = vmatprep.mubr.msk.f32.mxu1 %vm2852_vm1, %v2853_v39  ;;  %v578_v13 = vpop.permute.xlu0 %577 }
 0x50e   :  { %v580_v16 = vpop.permute.xlu1 %579 }
 0x510   :  { %v582_v17 = vpop.permute.xlu0 %581 }
 0x512   :  { %v584_v19 = vpop.permute.xlu1 %583 }
 0x514   :  { %v586_v29 = vpop.permute.xlu0 %585 }
 0x516   :  { %v588_v32 = vpop.permute.xlu1 %587 }
 0x518   :  { %v590_v43 = vpop.permute.xlu0 %589 }
 0x51a   :  { %v592_v47 = vpop.permute.xlu1 %591 }
 0x5d2   :  { %v2336_v18 = vpop.f32.mrb[2].mxu0 }
 0x5d3   :  { %v602_v20 = vmul.f32 %v2336_v18, %v580_v16  ;;  %v538_v21 = vpop.f32.mrb[3].mxu0 }
 0x5d4   :  { %v601_v22 = vmul.f32 %v578_v13, %v538_v21  ;;  %v2120_v13 = vld [vmem:[#allocation8] ss:$0 sm:$0xff] }
 0x5d5   :  { %v610_v23 = vsel %vm131_vm0, %v602_v20, 0.0  ;;  %v791_v20 = vpop.permute.xlu0 %790 }
 0x5d6   :  { %v609_v24 = vsel %vm131_vm0, %v601_v22, 0.0  ;;  %v2339_v26 = vpop.f32.mrb[4].mxu0 }
 0x5d7   :  { %v611_v27 = vadd.f32 %v610_v23, %v609_v24  ;;  %v548_v28 = vpop.f32.mrb[5].mxu0  ;;  %v604_v30 = vmul.f32 %v2339_v26, %v584_v19 }
 0x5d8   :  { %v603_v31 = vmul.f32 %v582_v17, %v548_v28  ;;  %v2121_v17 = vld [vmem:[#allocation9] ss:$0 sm:$0xff] }
 0x5d9   :  { %v614_v37 = vsel %vm131_vm0, %v604_v30, 0.0 }
 0x5da   :  { %v612_v33 = vsel %vm131_vm0, %v603_v31, 0.0  ;;  %v2342_v34 = vpop.f32.mrb[0].mxu1 }
 0x5db   :  { %v613_v35 = vadd.f32 %v612_v33, %v611_v27  ;;  %v558_v36 = vpop.f32.mrb[1].mxu1  ;;  %v606_v38 = vmul.f32 %v2342_v34, %v588_v32  ;;  %v905_v32 = vld [vmem:[%s3677_s16 + $0x8] sm:$0xff]  ;;  %v904_v33 = vld [vmem:[%s3677_s16] sm:$0xff] }
 0x5dc   :  { %v605_v41 = vmul.f32 %v586_v29, %v558_v36  ;;  %v909_v36 = vld [vmem:[%s3677_s16 + $0x28] sm:$0xff] }
 0x5dd   :  { %v615_v42 = vadd.f32 %v614_v37, %v613_v35  ;;  %v618_v50 = vsel %vm131_vm0, %v606_v38, 0.0  ;;  %v906_v35 = vld [vmem:[%s3677_s16 + $0x10] sm:$0xff]  ;;  %v911_v37 = vld [vmem:[%s3677_s16 + $0x38] sm:$0xff] }
 0x5de   :  { %v616_v44 = vsel %vm131_vm0, %v605_v41, 0.0  ;;  %v2345_v45 = vpop.f32.mrb[2].mxu1  ;;  %v2561_v38 = vpack.c.bf16 %v906_v35, %v904_v33  ;;  %v2563_v41 = vpack.c.bf16 %v911_v37, %v909_v36  ;;  %v1023_v35 = vld [vmem:[%s3679_s18 + $0x78] sm:$0xff]  ;;  %v920_v37 = vld [vmem:[%s3678_s17] ss:$2 sm:$0x3] }
 0x5df   :  { %v617_v48 = vadd.f32 %v616_v44, %v615_v42  ;;  %v568_v49 = vpop.f32.mrb[3].mxu1  ;;  %v608_v51 = vmul.f32 %v2345_v45, %v592_v47  ;;  %v908_v42 = vld [vmem:[%s3677_s16 + $0x20] sm:$0xff]  ;;  %v913_v44 = vld [vmem:[%s3677_s16 + $0x48] sm:$0xff]  ;;  %v915_v45 = vld [vmem:[%s3677_s16 + $0x58] sm:$0xff] }
 0x5e0   :  { %v607_v52 = vmul.f32 %v590_v43, %v568_v49  ;;  %v910_v43 = vld [vmem:[%s3677_s16 + $0x30] sm:$0xff]  ;;  %v912_v49 = vld [vmem:[%s3677_s16 + $0x40] sm:$0xff] }
 0x5e1   :  { %v619_v53 = vadd.f32 %v618_v50, %v617_v48  ;;  %v622_v56 = vsel %vm131_vm0, %v608_v51, 0.0  ;;  %v2565_v47 = vpack.c.bf16 %v910_v43, %v908_v42  ;;  %v2567_v48 = vpack.c.bf16 %v915_v45, %v913_v44  ;;  %v914_v50 = vld [vmem:[%s3677_s16 + $0x50] sm:$0xff]  ;;  %v917_v51 = vld [vmem:[%s3677_s16 + $0x68] sm:$0xff] }
 0x5e2   :  { %v620_v54 = vsel %vm131_vm0, %v607_v52, 0.0  ;;  %v919_v52 = vld [vmem:[%s3677_s16 + $0x78] sm:$0xff] }
 0x5e3   :  { %v621_v55 = vadd.f32 %v620_v54, %v619_v53  ;;  %v2569_v53 = vpack.c.bf16 %v914_v50, %v912_v49  ;;  %v2571_v54 = vpack.c.bf16 %v919_v52, %v917_v51 }
 0x5e5   :  { %v623_v58 = vadd.f32 %v622_v56, %v621_v55  ;;  %v916_v55 = vld [vmem:[%s3677_s16 + $0x60] sm:$0xff]  ;;  %v918_v56 = vld [vmem:[%s3677_s16 + $0x70] sm:$0xff] }
 0x5e7   :  { %2355 = vmatmul.mubr.msk.f32.vlgmr.msra.gmra.mrb[6].mxu0 %vm131_vm0, %v623_v58 }
 0x5e8   :  { %2376 = vmatprep.mubr.msk.f32.mxu0 %vm2852_vm1, %v2853_v39  ;;  %2555 = vmatpush3.bf16.msra.mxu0 %v2554_v3  ;;  %v1011_v3 = vld [vmem:[%s3679_s18 + $0x18] sm:$0xff] }
 0x5e9   :  { %2556 = vmatprep.subr.bf16.mxu0 %v2851_v25 }
 0x5ec   :  { %2558 = vmatpush3.bf16.msra.mxu0 %v2557_v7 }
 0x5ed   :  { %2575 = vmatprep.subr.bf16.mxu0 %v2851_v25 }
 0x6ba   :  { %v693_v59 = vpop.f32.mrb[6].mxu0 }
 0x6bb   :  { %v697_v60 = vmul.f32 0.125, %v693_v59  ;;  %v2356_v61 = vpop.f32.mrb[7].mxu0 }
 0x6bd   :  { %v698_v62 = vsub.f32 %v623_v58, %v697_v60  ;;  %v2573_v58 = vpack.c.bf16 %v918_v56, %v916_v55 }
 0x6bf   :  { %v699_v63 = vmul.f32 %v698_v62, %v698_v62 }
 0x6c1   :  { %2366 = vmatmul.mubr.msk.f32.vlgmr.msra.gmra.mrb[4].mxu1 %vm131_vm0, %v699_v63  ;;  %v1009_v63 = vld [vmem:[%s3679_s18 + $0x8] sm:$0xff] }
 0x6c2   :  { %999 = vmatprep.mubr.f32.mxu1 %v2853_v39 }
 0x794   :  { %v769_v9 = vpop.f32.mrb[4].mxu1 }
 0x795   :  { %v773_v10 = vmul.f32 0.125, %v769_v9  ;;  %v2367_v57 = vpop.f32.mrb[5].mxu1  ;;  %v2579_v9 = vpack.c.bf16 %v1011_v3, %v1010_v0 }
 0x796   :  { %v1012_v57 = vld [vmem:[%s3679_s18 + $0x20] sm:$0xff] }
 0x797   :  { %v774_v11 = vadd.f32 1e-05, %v773_v10  ;;  %v2124_v10 = vld [vmem:[%s3670_s9] ss:$0 sm:$0xff] }
 0x799   :  { %2703 = vrsqrt.f32 %v774_v11  ;;  %v1013_v11 = vld [vmem:[%s3679_s18 + $0x28] sm:$0xff] }
 0x7a3   :  { %v2704_v12 = vpop.eup %2703 }
 0x7a4   :  { %v776_v16 = vmul.f32 %v2704_v12, %v698_v62  ;;  %v1008_v62 = vld [vmem:[%s3679_s18] sm:$0xff] }
 0x7a5   :  { %v2576_v1 = vpack.c.bf16 %v1009_v63, %v1008_v62 }
 0x7a6   :  { %v782_v18 = vmul.f32 %v2120_v13, %v776_v16  ;;  %v2582_v16 = vpack.c.bf16 %v1013_v11, %v1012_v57  ;;  %v2134_v57 = vld [vmem:[%s3671_s10 + $0x60] sm:$0xff]  ;;  %v2135_v11 = vld [vmem:[%s3671_s10 + $0x68] sm:$0xff] }
 0x7a8   :  { %v788_v19 = vadd.f32 %v2121_v17, %v782_v18  ;;  %v1014_v17 = vld [vmem:[%s3679_s18 + $0x30] sm:$0xff]  ;;  %v1015_v18 = vld [vmem:[%s3679_s18 + $0x38] sm:$0xff] }
 0x7aa   :  { %v793_v21 = vmul.f32 %v791_v20, %v788_v19 }
 0x7ac   :  { %2377 = vmatmul.mubr.msk.f32.vlgmr.msra.gmra.mrb[8].mxu0 %vm131_vm0, %v793_v21  ;;  %v2585_v21 = vpack.c.bf16 %v1015_v18, %v1014_v17 }
 0x7ad   :  { %2411 = vmatprep.mubr.msk.f32.mxu0 %vm2852_vm1, %v2853_v39  ;;  %2577 = vmatpush3.bf16.msra.mxu0 %v2576_v1 }
 0x7ae   :  { %2578 = vmatprep.subr.bf16.mxu0 %v2851_v25 }
 0x7b1   :  { %2580 = vmatpush3.bf16.msra.mxu0 %v2579_v9  ;;  %v2133_v9 = vld [vmem:[%s3671_s10 + $0x58] sm:$0xff] }
 0x7b2   :  { %2581 = vmatprep.subr.bf16.mxu0 %v2851_v25 }
 0x7b5   :  { %2583 = vmatpush3.bf16.msra.mxu0 %v2582_v16  ;;  %v2137_v16 = vld [vmem:[%s3671_s10 + $0x78] sm:$0xff] }
 0x7b6   :  { %2584 = vmatprep.subr.bf16.mxu0 %v2851_v25 }
 0x7b9   :  { %2586 = vmatpush3.bf16.msra.mxu0 %v2585_v21 }
 0x7ba   :  { %2587 = vmatprep.subr.bf16.mxu0 %v2851_v25 }
 0x87f   :  { %v867_v22 = vpop.f32.mrb[8].mxu0 }
 0x880   :  { %v3216_v23 = vadd.f32 %v867_v22, %v3030_v15  ;;  %v2378_v24 = vpop.f32.mrb[9].mxu0  ;;  %v907_v15 = vld [vmem:[%s3677_s16 + $0x18] sm:$0xff]  ;;  %v1016_v22 = vld [vmem:[%s3679_s18 + $0x40] sm:$0xff] }
 0x881   :  { %v2559_v34 = vpack.c.bf16 %v907_v15, %v905_v32  ;;  %v1017_v24 = vld [vmem:[%s3679_s18 + $0x48] sm:$0xff]  ;;  %v1020_v32 = vld [vmem:[%s3679_s18 + $0x60] sm:$0xff] }
 0x882   :  { %v874_v26 = vsel %vm131_vm0, %v3216_v23, 0.0  ;;  %v1021_v15 = vld [vmem:[%s3679_s18 + $0x68] sm:$0xff] }
 0x883   :  { %875 = vadd.xlane.f32.xlu1 %v874_v26  ;;  %2560 = vmatprep.subr.bf16.mxu1 %v2559_v34  ;;  %v2588_v26 = vpack.c.bf16 %v1017_v24, %v1016_v22  ;;  %v2594_v33 = vpack.c.bf16 %v1021_v15, %v1020_v32  ;;  %v1022_v34 = vld [vmem:[%s3679_s18 + $0x70] sm:$0xff]  ;;  %v2128_v22 = vld [vmem:[%s3667_s6 + $0x1] ss:$0 sm:$0xff]  ;;  %v2143_v32 = vld [vmem:[%s3673_s12 + $0x58] sm:$0xff] }
 0x884   :  { %2562 = vmatpush1.bf16.msra.mxu1 %v2561_v38  ;;  %v2597_v36 = vpack.c.bf16 %v1023_v35, %v1022_v34  ;;  %v925_v38 = vrot.slane %v920_v37, %v3145_v14  ;;  %v2145_v15 = vld [vmem:[%s3673_s12 + $0x68] sm:$0xff]  ;;  %v2147_v35 = vld [vmem:[%s3673_s12 + $0x78] sm:$0xff] }
 0x885   :  { %2564 = vmatprep.subr.bf16.mxu1 %v2563_v41  ;;  %2589 = vmatpush3.bf16.msra.mxu0 %v2588_v26  ;;  %v2129_v26 = vld [vmem:[%s3668_s7 + $0x1] ss:$0 sm:$0xff] }
 0x886   :  { %2590 = vmatprep.subr.bf16.mxu0 %v2851_v25 }
 0x888   :  { %2566 = vmatpush1.bf16.msra.mxu1 %v2565_v47  ;;  %v928_v47 = vsub.s32 1, %v3066_v40 }
 0x889   :  { %2568 = vmatprep.subr.bf16.mxu1 %v2567_v48 }
 0x88a   :  { %v929_v48 = vrot.slane %v920_v37, %v928_v47 }
 0x88c   :  { %2570 = vmatpush1.bf16.msra.mxu1 %v2569_v53  ;;  %v2126_v53 = vld [vmem:[%s3680_s19] ss:$0 sm:$0xff] }
 0x88d   :  { %2572 = vmatprep.subr.bf16.mxu1 %v2571_v54 }
 0x890   :  { %2574 = vmatpush1.bf16.msra.mxu1 %v2573_v58 }
 0x891   :  { %2599 = vmatprep.subr.bf16.mxu1 %v2851_v25 }
 0x910   :  { %v876_v27 = vpop.xlane.xlu1 %875 }
 0x911   :  { %v877_v28 = vmul.f32 0.03125, %v876_v27  ;;  %v1018_v27 = vld [vmem:[%s3679_s18 + $0x50] sm:$0xff] }
 0x913   :  { %v878_v29 = vsub.f32 %v3216_v23, %v877_v28  ;;  %v1019_v28 = vld [vmem:[%s3679_s18 + $0x58] sm:$0xff] }
 0x915   :  { %v879_v30 = vmul.f32 %v878_v29, %v878_v29 }
 0x917   :  { %v880_v31 = vsel %vm131_vm0, %v879_v30, 0.0 }
 0x918   :  { %881 = vadd.xlane.f32.xlu0 %v880_v31 }
 0x9a5   :  { %v882_v59 = vpop.xlane.xlu0 %881 }
 0x9a6   :  { %v883_v60 = vmul.f32 0.03125, %v882_v59 }
 0x9a8   :  { %v884_v61 = vadd.f32 1e-05, %v883_v60 }
 0x9aa   :  { %2705 = vrsqrt.f32 %v884_v61 }
 0x9b4   :  { %v2706_v5 = vpop.eup %2705 }
 0x9b5   :  { %v886_v7 = vmul.f32 %v2706_v5, %v878_v29  ;;  %v2591_v29 = vpack.c.bf16 %v1019_v28, %v1018_v27  ;;  %v2130_v5 = vld [vmem:[%s3671_s10 + $0x40] sm:$0xff] }
 0x9b7   :  { %v891_v12 = vmul.f32 %v2123_v6, %v886_v7  ;;  %2592 = vmatpush3.bf16.msra.mxu0 %v2591_v29  ;;  %v2132_v6 = vld [vmem:[%s3671_s10 + $0x50] sm:$0xff] }
 0x9b8   :  { %2593 = vmatprep.subr.bf16.mxu0 %v2851_v25 }
 0x9b9   :  { %v896_v13 = vadd.f32 %v2124_v10, %v891_v12  ;;  %v2603_v10 = vpack.c.bf16 %v2133_v9, %v2132_v6  ;;  %v2606_v12 = vpack.c.bf16 %v2135_v11, %v2134_v57 }
 0x9bb   :  { %v897_v19 = vrot.slane %v896_v13, 7  ;;  %2595 = vmatpush3.bf16.msra.mxu0 %v2594_v33 }
 0x9bc   :  { %2596 = vmatprep.subr.bf16.mxu0 %v2851_v25 }
 0x9bd   :  { %v898_v20 = vsel %vm123_vm2, 0.0, %v897_v19 }
 0x9be   :  { %900 = vrot.lane.b32.xlu0 %v898_v20, %s2854_s22 }
 0x9bf   :  { %2598 = vmatpush3.bf16.msra.mxu0 %v2597_v36 }
 0x9c0   :  { %2619 = vmatprep.subr.bf16.mxu0 %v2851_v25 }
 0xa30   :  { %v901_v30 = vpop.permute.xlu0 %900 }
 0xa31   :  { %v903_v31 = vsel %vm131_vm0, %v896_v13, %v901_v30  ;;  %v2136_v13 = vld [vmem:[%s3671_s10 + $0x70] sm:$0xff] }
 0xa32   :  { %2125 = vmatmul.mubr.msk.f32.vlgmr.msra.gmra.mrb[6].mxu1 %vm202_vm3, %v903_v31  ;;  %v2609_v17 = vpack.c.bf16 %v2137_v16, %v2136_v13  ;;  %v2141_v31 = vld [vmem:[%s3673_s12 + $0x48] sm:$0xff] }
 0xa33   :  { %2430 = vmatprep.mubr.msk.f32.mxu1 %vm2852_vm1, %v2853_v39 }
 0xb05   :  { %v1001_v41 = vpop.f32.mrb[6].mxu1 }
 0xb06   :  { %v1002_v42 = vadd.f32 %v1001_v41, %v925_v38  ;;  %v1003_v43 = vpop.f32.mrb[7].mxu1  ;;  %v2140_v38 = vld [vmem:[%s3673_s12 + $0x40] sm:$0xff]  ;;  %v2142_v41 = vld [vmem:[%s3673_s12 + $0x50] sm:$0xff] }
 0xb07   :  { %v1004_v49 = vadd.f32 %v1003_v43, %v929_v48  ;;  %v2146_v43 = vld [vmem:[%s3673_s12 + $0x70] sm:$0xff] }
 0xb08   :  { %v1006_v44 = vmax.f32 %v1002_v42, 0.0  ;;  %v2144_v42 = vld [vmem:[%s3673_s12 + $0x60] sm:$0xff]  ;;  %s3691_s12 = sld [smem:[#allocation20_spill]] }
 0xb09   :  { %v2127_v50 = vmul.f32 -1.442695, %v1004_v49 }
 0xb0a   :  { %v1007_v45 = vmul.f32 %v1006_v44, %v1006_v44 }
 0xb0b   :  { %2707 = vpow2.f32 %v2127_v50 }
 0xb0c   :  { %2412 = vmatmul.mubr.f32.vlgmr.msra.gmra.mrb[10].mxu0 %v1007_v45 }
 0xb0d   :  { %2621 = vmatpush3.bf16.msra.mxu0 %v3122_v2  ;;  %2461 = vmatprep.mubr.msk.f32.mxu0 %vm2852_vm1, %v2853_v39 }
 0xb0e   :  { %2622 = vmatprep.subr.bf16.mxu0 %v2851_v25 }
 0xb11   :  { %2624 = vmatpush3.bf16.msra.mxu0 %v3124_v4 }
 0xb12   :  { %2625 = vmatprep.subr.bf16.mxu0 %v2851_v25 }
 0xb15   :  { %v2708_v51 = vpop.eup %2707 }
 0xb16   :  { %v1102_v52 = vadd.f32 1.0, %v2708_v51 }
 0xb18   :  { %2709 = vrcp.f32 %v1102_v52 }
 0xb22   :  { %v2710_v58 = vpop.eup %2709 }
 0xbdf   :  { %v1095_v54 = vpop.f32.mrb[10].mxu0 }
 0xbe0   :  { %v1096_v55 = vadd.f32 %v2126_v53, %v1095_v54  ;;  %v2413_v56 = vpop.f32.mrb[11].mxu0 }
 0xbe2   :  { %v1105_v59 = vmul.f32 %v2710_v58, %v1096_v55 }
 0xbe4   :  { %v3357_v60 = vadd.f32 %v1105_v59, %v3216_v23  ;;  %v2131_v23 = vld [vmem:[%s3671_s10 + $0x48] sm:$0xff] }
 0xbe5   :  { %v2600_v7 = vpack.c.bf16 %v2131_v23, %v2130_v5 }
 0xbe6   :  { %v1109_v61 = vsel %vm131_vm0, %v3357_v60, 0.0 }
 0xbe7   :  { %1110 = vadd.xlane.f32.xlu1 %v1109_v61  ;;  %2601 = vmatpush3.bf16.msra.mxu1 %v2600_v7 }
 0xbe8   :  { %2602 = vmatprep.subr.bf16.mxu1 %v2851_v25 }
 0xbeb   :  { %2604 = vmatpush3.bf16.msra.mxu1 %v2603_v10 }
 0xbec   :  { %2605 = vmatprep.subr.bf16.mxu1 %v2851_v25 }
 0xbef   :  { %2607 = vmatpush3.bf16.msra.mxu1 %v2606_v12 }
 0xbf0   :  { %2608 = vmatprep.subr.bf16.mxu1 %v2851_v25 }
 0xbf3   :  { %2610 = vmatpush3.bf16.msra.mxu1 %v2609_v17 }
 0xbf4   :  { %2612 = vmatprep.subr.bf16.mxu1 %v3122_v2 }
 0xc74   :  { %v1111_v62 = vpop.xlane.xlu1 %1110 }
 0xc75   :  { %v1112_v63 = vmul.f32 0.03125, %v1111_v62 }
 0xc77   :  { %v1113_v0 = vsub.f32 %v3357_v60, %v1112_v63 }
 0xc79   :  { %v1114_v1 = vmul.f32 %v1113_v0, %v1113_v0 }
 0xc7b   :  { %v1115_v3 = vsel %vm131_vm0, %v1114_v1, 0.0 }
 0xc7c   :  { %1116 = vadd.xlane.f32.xlu1 %v1115_v3 }
 0xd09   :  { %v1117_v18 = vpop.xlane.xlu1 %1116 }
 0xd0a   :  { %v1118_v19 = vmul.f32 0.03125, %v1117_v18 }
 0xd0c   :  { %v1119_v20 = vadd.f32 1e-05, %v1118_v19 }
 0xd0e   :  { %2711 = vrsqrt.f32 %v1119_v20 }
 0xd18   :  { %v2712_v21 = vpop.eup %2711 }
 0xd19   :  { %v1121_v24 = vmul.f32 %v2712_v21, %v1113_v0 }
 0xd1b   :  { %v1126_v27 = vmul.f32 %v2128_v22, %v1121_v24 }
 0xd1d   :  { %v1131_v28 = vadd.f32 %v2129_v26, %v1126_v27 }
 0xd1f   :  { %v1132_v29 = vrot.slane %v1131_v28, 7 }
 0xd21   :  { %v1133_v30 = vsel %vm123_vm2, 0.0, %v1132_v29 }
 0xd22   :  { %1135 = vrot.lane.b32.xlu1 %v1133_v30, %s2854_s22 }
 0xd26   :  { %1348 = vrot.lane.b32.xlu1 %v2141_v31, %s2854_s22 }
 0xd2a   :  { %1352 = vrot.lane.b32.xlu1 %v2143_v32, %s2854_s22 }
 0xd2e   :  { %1356 = vrot.lane.b32.xlu1 %v2145_v15, %s2854_s22 }
 0xd32   :  { %1360 = vrot.lane.b32.xlu1 %v2147_v35, %s2854_s22 }
 0xd94   :  { %v1136_v33 = vpop.permute.xlu1 %1135 }
 0xd95   :  { %v1138_v34 = vsel %vm131_vm0, %v1131_v28, %v1136_v33 }
 0xd96   :  { %2431 = vmatmul.mubr.msk.f32.vlgmr.msra.gmra.mrb[8].mxu1 %vm202_vm3, %v1138_v34 }
 0xd97   :  { %2614 = vmatpush3.bf16.msra.mxu1 %v3122_v2 }
 0xd98   :  { %2616 = vmatprep.subr.bf16.mxu1 %v3124_v4  ;;  %v1349_v51 = vpop.permute.xlu1 %1348 }
 0xd9b   :  { %2618 = vmatpush3.bf16.msra.mxu1 %v3124_v4 }
 0xd9c   :  { %2631 = vmatprep.subr.bf16.mxu1 %v2851_v25  ;;  %v1353_v56 = vpop.permute.xlu1 %1352 }
 0xda0   :  { %v1357_v12 = vpop.permute.xlu1 %1356 }
 0xda4   :  { %v1361_v27 = vpop.permute.xlu1 %1360 }
 0xe69   :  { %v3422_v36 = vpop.f32.mrb[8].mxu1 }
 0xe6a   :  { %1327 = vrot.lane.b32.xlu0 %v3422_v36, %s2854_s22  ;;  %v2432_v37 = vpop.f32.mrb[9].mxu1  ;;  %v1245_v44 = vrot.slane %v3422_v36, %v3137_v8  ;;  %v1238_v45 = vcombine.high %v3422_v36, %v3422_v36  ;;  %v2139_v1 = vmul.f32 -1.442695, %v3422_v36 }
 0xe6c   :  { %v1253_v48 = vcombine.high %v1245_v44, %v1245_v44  ;;  %v1252_v49 = vrot.slane %v1238_v45, %v3137_v8  ;;  %v1261_v52 = vrot.slane %v1245_v44, %v3137_v8  ;;  %2713 = vpow2.f32 %v2139_v1 }
 0xe6e   :  { %1346 = vrot.lane.b32.xlu0 %v2140_v38, %s2854_s22  ;;  %v1275_v50 = vrot.slane %v1253_v48, %v3137_v8  ;;  %v1254_v53 = vcombine.high %v1252_v49, %v1252_v49  ;;  %v1290_v59 = vrot.slane %v1261_v52, %v3145_v14  ;;  %v1283_v63 = vcombine.high %v1261_v52, %v1261_v52 }
 0xe6f   :  { %v1268_v7 = vrot.slane %v1252_v49, %v3137_v8 }
 0xe70   :  { %v1285_v54 = vcombine.high %v1275_v50, %v1275_v50  ;;  %v1294_v55 = vrot.slane %v1275_v50, %v3145_v14  ;;  %v1282_v61 = vrot.slane %v1254_v53, %v3137_v8  ;;  %v1298_v57 = vrot.slane %v1283_v63, %v3145_v14 }
 0xe71   :  { %v1306_v8 = vrot.slane %v1268_v7, %v3145_v14  ;;  %v1284_v21 = vcombine.high %v1268_v7, %v1268_v7 }
 0xe72   :  { %1350 = vrot.lane.b32.xlu0 %v2142_v41, %s2854_s22  ;;  %v1302_v0 = vrot.slane %v1285_v54, %v3145_v14  ;;  %v1286_v9 = vcombine.high %v1282_v61, %v1282_v61  ;;  %v1310_v11 = vrot.slane %v1282_v61, %v3145_v14 }
 0xe73   :  { %v1314_v30 = vrot.slane %v1284_v21, %v3145_v14 }
 0xe74   :  { %v1318_v19 = vrot.slane %v1286_v9, %v3145_v14 }
 0xe76   :  { %1354 = vrot.lane.b32.xlu0 %v2144_v42, %s2854_s22  ;;  %v2714_v33 = vpop.eup %2713 }
 0xe77   :  { %v1224_v35 = vadd.f32 1.0, %v2714_v33 }
 0xe79   :  { %2715 = vrcp.f32 %v1224_v35  ;;  %v1741_v35 = vld [vmem:[#allocation3 + $0x20] sm:$0xff] }
 0xe7a   :  { %1358 = vrot.lane.b32.xlu0 %v2146_v43, %s2854_s22 }
 0xe83   :  { %v2716_v37 = vpop.eup %2715 }
 0xe84   :  { %v1227_v38 = vmul.f32 %v2716_v37, %v3422_v36  ;;  %v1742_v37 = vld [vmem:[#allocation3 + $0x28] sm:$0xff] }
 0xedc   :  { %v1328_v58 = vpop.permute.xlu0 %1327 }
 0xedd   :  { %v1331_v62 = vmul.f32 %v1328_v58, %v1294_v55  ;;  %v1330_v3 = vmul.f32 %v1328_v58, %v1290_v59  ;;  %v1333_v23 = vmul.f32 %v1328_v58, %v1302_v0  ;;  %v1332_v13 = vmul.f32 %v1328_v58, %v1298_v57 }
 0xede   :  { %v1335_v17 = vmul.f32 %v1328_v58, %v1310_v11  ;;  %v1337_v22 = vmul.f32 %v1328_v58, %v1318_v19  ;;  %v1334_v24 = vmul.f32 %v1328_v58, %v1306_v8  ;;  %v1336_v32 = vmul.f32 %v1328_v58, %v1314_v30 }
 0xedf   :  { %v1371_v5 = vmul.f32 %v1349_v51, %v1331_v62  ;;  %v1373_v16 = vmul.f32 %v1353_v56, %v1333_v23 }
 0xee0   :  { %v1347_v6 = vpop.permute.xlu0 %1346  ;;  %v1375_v26 = vmul.f32 %v1357_v12, %v1335_v17  ;;  %v1377_v31 = vmul.f32 %v1361_v27, %v1337_v22 }
 0xee1   :  { %v1370_v10 = vmul.f32 %v1347_v6, %v1330_v3  ;;  %1388 = vrot.lane.b32.xlu1 %v1371_v5, %s2856_s29 }
 0xee3   :  { %1386 = vrot.lane.b32.xlu0 %v1370_v10, %s2856_s29 }
 0xee4   :  { %v1351_v18 = vpop.permute.xlu0 %1350 }
 0xee5   :  { %v1372_v20 = vmul.f32 %v1351_v18, %v1332_v13  ;;  %1392 = vrot.lane.b32.xlu1 %v1373_v16, %s2856_s29 }
 0xee7   :  { %1390 = vrot.lane.b32.xlu0 %v1372_v20, %s2856_s29 }
 0xee8   :  { %v1355_v28 = vpop.permute.xlu0 %1354 }
 0xee9   :  { %v1374_v29 = vmul.f32 %v1355_v28, %v1334_v24  ;;  %1396 = vrot.lane.b32.xlu1 %v1375_v26, %s2856_s29 }
 0xeeb   :  { %1394 = vrot.lane.b32.xlu0 %v1374_v29, %s2856_s29 }
 0xeec   :  { %v1359_v15 = vpop.permute.xlu0 %1358 }
 0xeed   :  { %v1376_v34 = vmul.f32 %v1359_v15, %v1336_v32  ;;  %1400 = vrot.lane.b32.xlu1 %v1377_v31, %s2856_s29 }
 0xeef   :  { %1398 = vrot.lane.b32.xlu0 %v1376_v34, %s2856_s29 }
 0xef1   :  { %1525 = vrot.lane.b32.xlu1 %v1294_v55, %s2857_s1 }
 0xef3   :  { %1523 = vrot.lane.b32.xlu0 %v1290_v59, %s2857_s1 }
 0xef5   :  { %1529 = vrot.lane.b32.xlu1 %v1302_v0, %s2857_s1 }
 0xef7   :  { %1527 = vrot.lane.b32.xlu0 %v1298_v57, %s2857_s1 }
 0xef9   :  { %1533 = vrot.lane.b32.xlu1 %v1310_v11, %s2857_s1 }
 0xefb   :  { %1531 = vrot.lane.b32.xlu0 %v1306_v8, %s2857_s1 }
 0xefd   :  { %1537 = vrot.lane.b32.xlu1 %v1318_v19, %s2857_s1 }
 0xeff   :  { %1535 = vrot.lane.b32.xlu0 %v1314_v30, %s2857_s1 }
 0xf03   :  { %1736 = vrot.lane.b32.xlu0 %v1227_v38, %s2854_s22  ;;  %v2632_v38 = vpack.c.bf16 %v1742_v37, %v1741_v35  ;;  %v2161_v37 = vld [vmem:[%s3669_s8 + $0x1] ss:$0 sm:$0xff]  ;;  %s2858_s8 = smov [#allocation11]  }
 0xf04   :  { %s2093_s23 = sshll.u32 %s2858_s8, 4  ;;  %s2094_s23 = int_to_ptr.vmem [resolvable:$true] %s2093_s23 }
 0xf05   :  { %p2820_p5 = scmp.lt.s32.totalorder %s2094_s23, %s2094_s23 }
 0xf53   :  { %v1389_v41 = vpop.permute.xlu1 %1388 }
 0xf55   :  { %v1387_v42 = vpop.permute.xlu0 %1386 }
 0xf56   :  { %2441 = vmatprep.mubr.msk.f32.mxu1 %vm131_vm0, %v1387_v42 }
 0xf57   :  { %2442 = vmatmul.mubr.msk.f32.vlgmr.msra.gmra.mrb[10].mxu1 %vm131_vm0, %v1389_v41  ;;  %v1393_v43 = vpop.permute.xlu1 %1392  ;;  %v1744_v41 = vld [vmem:[#allocation3 + $0x38] sm:$0xff] }
 0xf58   :  { %2633 = vmatpush3.bf16.msra.mxu1 %v2632_v38 }
 0xf59   :  { %v1391_v44 = vpop.permute.xlu0 %1390  ;;  %2634 = vmatprep.subr.bf16.mxu1 %v2851_v25 }
 0xf5a   :  { %2444 = vmatprep.mubr.msk.f32.mxu1 %vm131_vm0, %v1391_v44 }
 0xf5b   :  { %2445 = vmatmul.mubr.msk.f32.gmra.mrb[12].mxu1 %vm131_vm0, %v1393_v43  ;;  %v1397_v45 = vpop.permute.xlu1 %1396 }
 0xf5d   :  { %v1395_v48 = vpop.permute.xlu0 %1394 }
 0xf5e   :  { %2447 = vmatprep.mubr.msk.f32.mxu1 %vm131_vm0, %v1395_v48 }
 0xf5f   :  { %2448 = vmatmul.mubr.msk.f32.gmra.mrb[14].mxu1 %vm131_vm0, %v1397_v45  ;;  %v1401_v49 = vpop.permute.xlu1 %1400 }
 0xf61   :  { %v1399_v36 = vpop.permute.xlu0 %1398 }
 0xf62   :  { %2450 = vmatprep.mubr.msk.f32.mxu1 %vm131_vm0, %v1399_v36  ;;  %v2158_v36 = vld [vmem:[#allocation8 + $0x1] ss:$0 sm:$0xff] }
 0xf63   :  { %2451 = vmatmul.mubr.msk.f32.gmra.mrb[16].mxu1 %vm131_vm0, %v1401_v49  ;;  %v1526_v50 = vpop.permute.xlu1 %1525 }
 0xf64   :  { %2483 = vmatprep.mubr.msk.f32.mxu1 %vm2852_vm1, %v2853_v39 }
 0xf65   :  { %v1524_v51 = vpop.permute.xlu0 %1523 }
 0xf67   :  { %v1530_v52 = vpop.permute.xlu1 %1529 }
 0xf69   :  { %v1528_v54 = vpop.permute.xlu0 %1527 }
 0xf6b   :  { %v1534_v1 = vpop.permute.xlu1 %1533 }
 0xf6d   :  { %v1532_v23 = vpop.permute.xlu0 %1531 }
 0xf6f   :  { %v1538_v16 = vpop.permute.xlu1 %1537 }
 0xf71   :  { %v1536_v19 = vpop.permute.xlu0 %1535 }
0x102a   :  { %v2443_v53 = vpop.f32.mrb[10].mxu1 }
0x102b   :  { %v1548_v55 = vmul.f32 %v2443_v53, %v1526_v50  ;;  %v1484_v56 = vpop.f32.mrb[11].mxu1  ;;  %v2159_v50 = vld [vmem:[#allocation9 + $0x1] ss:$0 sm:$0xff]  ;;  %v1737_v53 = vpop.permute.xlu0 %1736 }
0x102c   :  { %v1547_v58 = vmul.f32 %v1524_v51, %v1484_v56 }
0x102d   :  { %v1556_v59 = vsel %vm131_vm0, %v1548_v55, 0.0 }
0x102e   :  { %v1555_v61 = vsel %vm131_vm0, %v1547_v58, 0.0  ;;  %v2446_v62 = vpop.f32.mrb[12].mxu1 }
0x102f   :  { %v1557_v63 = vadd.f32 %v1556_v59, %v1555_v61  ;;  %v1494_v0 = vpop.f32.mrb[13].mxu1  ;;  %v1550_v3 = vmul.f32 %v2446_v62, %v1530_v52 }
0x1030   :  { %v1549_v5 = vmul.f32 %v1528_v54, %v1494_v0 }
0x1031   :  { %v1560_v57 = vsel %vm131_vm0, %v1550_v3, 0.0  ;;  %v2163_v3 = vld [vmem:[%s3677_s16 + $0x80] sm:$0xff] }
0x1032   :  { %v1558_v6 = vsel %vm131_vm0, %v1549_v5, 0.0  ;;  %v2449_v7 = vpop.f32.mrb[14].mxu1 }
0x1033   :  { %v1559_v9 = vadd.f32 %v1558_v6, %v1557_v63  ;;  %v1504_v10 = vpop.f32.mrb[15].mxu1  ;;  %v1552_v11 = vmul.f32 %v2449_v7, %v1534_v1  ;;  %v2168_v6 = vld [vmem:[%s3677_s16 + $0xa8] sm:$0xff]  ;;  %v2170_v7 = vld [vmem:[%s3677_s16 + $0xb8] sm:$0xff] }
0x1034   :  { %v1551_v12 = vmul.f32 %v1532_v23, %v1504_v10  ;;  %v2165_v23 = vld [vmem:[%s3677_s16 + $0x90] sm:$0xff]  ;;  %v2641_v10 = vpack.c.bf16 %v2170_v7, %v2168_v6 }
0x1035   :  { %v1561_v13 = vadd.f32 %v1560_v57, %v1559_v9  ;;  %v1564_v21 = vsel %vm131_vm0, %v1552_v11, 0.0  ;;  %v2639_v9 = vpack.c.bf16 %v2165_v23, %v2163_v3  ;;  %v2167_v57 = vld [vmem:[%s3677_s16 + $0xa0] sm:$0xff]  ;;  %v2169_v11 = vld [vmem:[%s3677_s16 + $0xb0] sm:$0xff] }
0x1036   :  { %v1562_v17 = vsel %vm131_vm0, %v1551_v12, 0.0  ;;  %v2452_v18 = vpop.f32.mrb[16].mxu1  ;;  %v2172_v12 = vld [vmem:[%s3677_s16 + $0xc8] sm:$0xff]  ;;  %v2179_v3 = vld [vmem:[%s3678_s17 + $0x1] ss:$2 sm:$0x3] }
0x1037   :  { %v1563_v20 = vadd.f32 %v1562_v17, %v1561_v13  ;;  %v1514_v8 = vpop.f32.mrb[17].mxu1  ;;  %v1554_v22 = vmul.f32 %v2452_v18, %v1538_v16  ;;  %v2174_v13 = vld [vmem:[%s3677_s16 + $0xd8] sm:$0xff]  ;;  %v2643_v16 = vpack.c.bf16 %v2169_v11, %v2167_v57  ;;  %v2171_v18 = vld [vmem:[%s3677_s16 + $0xc0] sm:$0xff] }
0x1038   :  { %v1553_v24 = vmul.f32 %v1536_v19, %v1514_v8  ;;  %v2645_v17 = vpack.c.bf16 %v2174_v13, %v2172_v12  ;;  %v2173_v19 = vld [vmem:[%s3677_s16 + $0xd0] sm:$0xff]  ;;  %v2178_v8 = vld [vmem:[%s3677_s16 + $0xf8] sm:$0xff] }
0x1039   :  { %v1565_v26 = vadd.f32 %v1564_v21, %v1563_v20  ;;  %v1568_v29 = vsel %vm131_vm0, %v1554_v22, 0.0  ;;  %v2176_v20 = vld [vmem:[%s3677_s16 + $0xe8] sm:$0xff]  ;;  %v2647_v21 = vpack.c.bf16 %v2173_v19, %v2171_v18 }
0x103a   :  { %v1566_v27 = vsel %vm131_vm0, %v1553_v24, 0.0  ;;  %v2649_v22 = vpack.c.bf16 %v2178_v8, %v2176_v20  ;;  %v2175_v24 = vld [vmem:[%s3677_s16 + $0xe0] sm:$0xff] }
0x103b   :  { %v1567_v28 = vadd.f32 %v1566_v27, %v1565_v26  ;;  %v2177_v26 = vld [vmem:[%s3677_s16 + $0xf0] sm:$0xff] }
0x103c   :  { %v2651_v27 = vpack.c.bf16 %v2177_v26, %v2175_v24 }
0x103d   :  { %v1569_v30 = vadd.f32 %v1568_v29, %v1567_v28 }
0x103f   :  { %2462 = vmatmul.mubr.msk.f32.vlgmr.msra.gmra.mrb[12].mxu0 %vm131_vm0, %v1569_v30 }
0x1040   :  { %2627 = vmatpush3.bf16.msra.mxu0 %v3122_v2  ;;  %2472 = vmatprep.mubr.msk.f32.mxu0 %vm2852_vm1, %v2853_v39  ;;  %v1743_v2 = vld [vmem:[#allocation3 + $0x30] sm:$0xff] }
0x1041   :  { %2628 = vmatprep.subr.bf16.mxu0 %v2851_v25  ;;  %v2635_v42 = vpack.c.bf16 %v1744_v41, %v1743_v2  ;;  %v2162_v41 = vld [vmem:[%s3670_s9 + $0x1] ss:$0 sm:$0xff]  ;;  %s2815_s9 = scalar_lea.vmem %s2094_s23, 128 }
0x1042   :  { %p2816_p4 = scmp.ne.s32.totalorder %s2094_s23, %s2815_s9  ;;  %p2821_p6 = scmp.lt.s32.totalorder %s2815_s9, %s2815_s9 }
0x1043   :  { %2636 = vmatpush3.bf16.msra.mxu1 %v2635_v42  ;;  %v2185_v42 = vld [vmem:[%s3679_s18 + $0xa0] sm:$0xff] }
0x1044   :  { %2630 = vmatpush3.bf16.msra.mxu0 %v3124_v4  ;;  %2653 = vmatprep.subr.bf16.mxu1 %v2851_v25  ;;  %p2822_p7 = por %p2821_p6, %p2820_p5 }
0x1046   :  { %p2823_p8 = pnand %p2822_p7, %p2816_p4 }
0x1112   :  { %v1639_v31 = vpop.f32.mrb[12].mxu0 }
0x1113   :  { %v1643_v32 = vmul.f32 0.125, %v1639_v31  ;;  %v2463_v15 = vpop.f32.mrb[13].mxu0  ;;  %v2181_v31 = vld [vmem:[%s3679_s18 + $0x80] sm:$0xff] }
0x1114   :  { %v2183_v15 = vld [vmem:[%s3679_s18 + $0x90] sm:$0xff] }
0x1115   :  { %v1644_v33 = vsub.f32 %v1569_v30, %v1643_v32  ;;  %v2182_v32 = vld [vmem:[%s3679_s18 + $0x88] sm:$0xff] }
0x1117   :  { %v1645_v34 = vmul.f32 %v1644_v33, %v1644_v33 }
0x1119   :  { %2473 = vmatmul.mubr.msk.f32.vlgmr.msra.gmra.mrb[14].mxu0 %vm131_vm0, %v1645_v34  ;;  %v2184_v34 = vld [vmem:[%s3679_s18 + $0x98] sm:$0xff] }
0x111a   :  { %1948 = vmatprep.mubr.f32.mxu0 %v2853_v39  ;;  %v2657_v2 = vpack.c.bf16 %v2184_v34, %v2183_v15 }
0x11ec   :  { %v1715_v4 = vpop.f32.mrb[14].mxu0 }
0x11ed   :  { %v1719_v43 = vmul.f32 0.125, %v1715_v4  ;;  %v2474_v44 = vpop.f32.mrb[15].mxu0  ;;  %v2186_v4 = vld [vmem:[%s3679_s18 + $0xa8] sm:$0xff] }
0x11ef   :  { %v1720_v45 = vadd.f32 1e-05, %v1719_v43 }
0x11f1   :  { %2717 = vrsqrt.f32 %v1720_v45  ;;  %v2660_v45 = vpack.c.bf16 %v2186_v4, %v2185_v42 }
0x11fb   :  { %v2718_v48 = vpop.eup %2717 }
0x11fc   :  { %v1722_v49 = vmul.f32 %v2718_v48, %v1644_v33  ;;  %v2654_v33 = vpack.c.bf16 %v2182_v32, %v2181_v31  ;;  %v2187_v48 = vld [vmem:[%s3679_s18 + $0xb0] sm:$0xff]  ;;  %v2199_v31 = vld [vmem:[%s3691_s12] ss:$0 sm:$0xff] }
0x11fd   :  { %v2200_v32 = vld [vmem:[%s3666_s5] ss:$0 sm:$0xff] }
0x11fe   :  { %v1728_v51 = vmul.f32 %v2158_v36, %v1722_v49  ;;  %v2188_v36 = vld [vmem:[%s3679_s18 + $0xb8] sm:$0xff] }
0x1200   :  { %v1734_v52 = vadd.f32 %v2159_v50, %v1728_v51  ;;  %v2663_v51 = vpack.c.bf16 %v2188_v36, %v2187_v48 }
0x1202   :  { %v1739_v54 = vmul.f32 %v1737_v53, %v1734_v52  ;;  %v2189_v52 = vld [vmem:[%s3679_s18 + $0xc0] sm:$0xff]  ;;  %v2190_v53 = vld [vmem:[%s3679_s18 + $0xc8] sm:$0xff] }
0x1204   :  { %2484 = vmatmul.mubr.msk.f32.vlgmr.msra.gmra.mrb[18].mxu1 %vm131_vm0, %v1739_v54  ;;  %v2666_v54 = vpack.c.bf16 %v2190_v53, %v2189_v52 }
0x1205   :  { %2518 = vmatprep.mubr.msk.f32.mxu1 %vm2852_vm1, %v2853_v39  ;;  %v2164_v39 = vld [vmem:[%s3677_s16 + $0x88] sm:$0xff]  ;;  %2655 = vmatpush3.bf16.msra.mxu1 %v2654_v33 }
0x1206   :  { %2656 = vmatprep.subr.bf16.mxu1 %v2851_v25 }
0x1209   :  { %2658 = vmatpush3.bf16.msra.mxu1 %v2657_v2 }
0x120a   :  { %2659 = vmatprep.subr.bf16.mxu1 %v2851_v25 }
0x120d   :  { %2661 = vmatpush3.bf16.msra.mxu1 %v2660_v45 }
0x120e   :  { %2662 = vmatprep.subr.bf16.mxu1 %v2851_v25 }
0x1211   :  { %2664 = vmatpush3.bf16.msra.mxu1 %v2663_v51 }
0x1212   :  { %2665 = vmatprep.subr.bf16.mxu1 %v2851_v25 }
0x1215   :  { %2667 = vmatpush3.bf16.msra.mxu1 %v2666_v54 }
0x1216   :  { %2668 = vmatprep.subr.bf16.mxu1 %v2851_v25 }
0x12d7   :  { %v1814_v55 = vpop.f32.mrb[18].mxu1 }
0x12d8   :  { %v3510_v56 = vadd.f32 %v1814_v55, %v3357_v60  ;;  %v2485_v58 = vpop.f32.mrb[19].mxu1  ;;  %v2166_v60 = vld [vmem:[%s3677_s16 + $0x98] sm:$0xff] }
0x12d9   :  { %v2637_v5 = vpack.c.bf16 %v2166_v60, %v2164_v39  ;;  %v2192_v55 = vld [vmem:[%s3679_s18 + $0xd8] sm:$0xff] }
0x12da   :  { %v1821_v59 = vsel %vm131_vm0, %v3510_v56, 0.0  ;;  %v2669_v58 = vpack.c.bf16 %v2192_v55, %v2191_v46  ;;  %v2196_v39 = vld [vmem:[%s3679_s18 + $0xf8] sm:$0xff] }
0x12db   :  { %1822 = vadd.xlane.f32.xlu1 %v1821_v59  ;;  %2638 = vmatprep.subr.bf16.mxu0 %v2637_v5  ;;  %v1874_v5 = vrot.slane %v2179_v3, %v3145_v14 }
0x12dc   :  { %2640 = vmatpush1.bf16.msra.mxu0 %v2639_v9  ;;  %2670 = vmatpush3.bf16.msra.mxu1 %v2669_v58 }
0x12dd   :  { %2642 = vmatprep.subr.bf16.mxu0 %v2641_v10  ;;  %2671 = vmatprep.subr.bf16.mxu1 %v2851_v25  ;;  %v1878_v10 = vrot.slane %v2179_v3, %v928_v47 }
0x12e0   :  { %2644 = vmatpush1.bf16.msra.mxu0 %v2643_v16  ;;  %v2197_v16 = vld [vmem:[%s3680_s19 + $0x1] ss:$0 sm:$0xff] }
0x12e1   :  { %2646 = vmatprep.subr.bf16.mxu0 %v2645_v17 }
0x12e4   :  { %2648 = vmatpush1.bf16.msra.mxu0 %v2647_v21 }
0x12e5   :  { %2650 = vmatprep.subr.bf16.mxu0 %v2649_v22 }
0x12e8   :  { %2652 = vmatpush1.bf16.msra.mxu0 %v2651_v27 }
0x1368   :  { %v1823_v61 = vpop.xlane.xlu1 %1822 }
0x1369   :  { %v1824_v62 = vmul.f32 0.03125, %v1823_v61 }
0x136b   :  { %v1825_v63 = vsub.f32 %v3510_v56, %v1824_v62  ;;  %v2193_v62 = vld [vmem:[%s3679_s18 + $0xe0] sm:$0xff] }
0x136d   :  { %v1826_v0 = vmul.f32 %v1825_v63, %v1825_v63 }
0x136f   :  { %v1827_v1 = vsel %vm131_vm0, %v1826_v0, 0.0 }
0x1370   :  { %1828 = vadd.xlane.f32.xlu0 %v1827_v1  ;;  %v2195_v1 = vld [vmem:[%s3679_s18 + $0xf0] sm:$0xff] }
0x1371   :  { %v2675_v60 = vpack.c.bf16 %v2196_v39, %v2195_v1 }
0x13fd   :  { %v1829_v28 = vpop.xlane.xlu0 %1828 }
0x13fe   :  { %v1830_v29 = vmul.f32 0.03125, %v1829_v28 }
0x1400   :  { %v1831_v30 = vadd.f32 1e-05, %v1830_v29 }
0x1402   :  { %2719 = vrsqrt.f32 %v1831_v30 }
0x140c   :  { %v2720_v35 = vpop.eup %2719 }
0x140d   :  { %v1833_v38 = vmul.f32 %v2720_v35, %v1825_v63  ;;  %v2194_v63 = vld [vmem:[%s3679_s18 + $0xe8] sm:$0xff] }
0x140e   :  { %v2672_v0 = vpack.c.bf16 %v2194_v63, %v2193_v62 }
0x140f   :  { %v1838_v43 = vmul.f32 %v2161_v37, %v1833_v38 }
0x1410   :  { %2673 = vmatpush3.bf16.msra.mxu1 %v2672_v0 }
0x1411   :  { %v1843_v44 = vadd.f32 %v2162_v41, %v1838_v43  ;;  %2674 = vmatprep.subr.bf16.mxu1 %v2851_v25 }
0x1413   :  { %v1844_v49 = vrot.slane %v1843_v44, 7 }
0x1414   :  { %2676 = vmatpush3.bf16.msra.mxu1 %v2675_v60 }
0x1415   :  { %v1845_v50 = vsel %vm123_vm2, 0.0, %v1844_v49 }
0x1416   :  { %1847 = vrot.lane.b32.xlu0 %v1845_v50, %s2854_s22 }
0x1488   :  { %v1848_v59 = vpop.permute.xlu0 %1847 }
0x1489   :  { %v1850_v61 = vsel %vm131_vm0, %v1843_v44, %v1848_v59 }
0x148a   :  { %2180 = vmatmul.mubr.msk.f32.vlgmr.msra.gmra.mrb[16].mxu0 %vm202_vm3, %v1850_v61 }
0x155d   :  { %v1950_v23 = vpop.f32.mrb[16].mxu0 }
0x155e   :  { %v1951_v6 = vadd.f32 %v1950_v23, %v1874_v5  ;;  %v1952_v7 = vpop.f32.mrb[17].mxu0 }
0x155f   :  { %v1953_v57 = vadd.f32 %v1952_v7, %v1878_v10 }
0x1560   :  { %v1955_v25 = vmax.f32 %v1951_v6, 0.0 }
0x1561   :  { %v2198_v11 = vmul.f32 -1.442695, %v1953_v57 }
0x1562   :  { %v1956_v9 = vmul.f32 %v1955_v25, %v1955_v25 }
0x1563   :  { %2721 = vpow2.f32 %v2198_v11 }
0x1564   :  { %2519 = vmatmul.mubr.f32.vlgmr.msra.gmra.mrb[20].mxu1 %v1956_v9 }
0x156d   :  { %v2722_v12 = vpop.eup %2721 }
0x156e   :  { %v2052_v13 = vadd.f32 1.0, %v2722_v12 }
0x1570   :  { %2723 = vrcp.f32 %v2052_v13 }
0x157a   :  { %v2724_v19 = vpop.eup %2723 }
0x1637   :  { %v2045_v14 = vpop.f32.mrb[20].mxu1 }
0x1638   :  { %v2046_v17 = vadd.f32 %v2197_v16, %v2045_v14  ;;  %v2520_v18 = vpop.f32.mrb[21].mxu1 }
0x163a   :  { %v2055_v20 = vmul.f32 %v2724_v19, %v2046_v17 }
0x163c   :  { %v2056_v8 = vadd.f32 %v2055_v20, %v3510_v56 }
0x163e   :  { %v2059_v40 = vsel %vm131_vm0, %v2056_v8, 0.0 }
0x163f   :  { %2060 = vadd.xlane.f32.xlu1 %v2059_v40 }
0x16cc   :  { %v2061_v47 = vpop.xlane.xlu1 %2060 }
0x16cd   :  { %v2062_v21 = vmul.f32 0.03125, %v2061_v47 }
0x16cf   :  { %v2063_v22 = vsub.f32 %v2056_v8, %v2062_v21 }
0x16d1   :  { %v2064_v24 = vmul.f32 %v2063_v22, %v2063_v22 }
0x16d3   :  { %v2065_v26 = vsel %vm131_vm0, %v2064_v24, 0.0 }
0x16d4   :  { %2066 = vadd.xlane.f32.xlu1 %v2065_v26 }
0x1761   :  { %v2067_v27 = vpop.xlane.xlu1 %2066 }
0x1762   :  { %v2068_v28 = vmul.f32 0.03125, %v2067_v27 }
0x1764   :  { %v2069_v29 = vadd.f32 1e-05, %v2068_v28 }
0x1766   :  { %2725 = vrsqrt.f32 %v2069_v29 }
0x1770   :  { %v2726_v30 = vpop.eup %2725 }
0x1771   :  { %v2071_v56 = vmul.f32 %v2726_v30, %v2063_v22 }
0x1773   :  { %v2078_v15 = vmul.f32 %v2199_v31, %v2071_v56 }
0x1775   :  { %v2085_v33 = vadd.f32 %v2200_v32, %v2078_v15 }
0x1777   :  { %2086 = vst.msk [vmem:[#allocation11] sm:$0xff] %vm131_vm0, %v2085_v33 }
0x1778   :  { %2826 = shalt.err (!%p2823_p8)
}
0x1779   :  { %s2827_s10 = scalar_lea.hbm %s3681_s20, 128 }
0x177a   :  { %p2828_p9 = scmp.ne.s32.totalorder %s3681_s20, %s2827_s10  ;;  %p2831_p10 = scmp.lt.u32.totalorder %s2827_s10, %s3681_s20 }
0x177c   :  { %p2833_p11 = pnand %p2831_p10, %p2828_p9 }
0x177e   :  { %2836 = shalt.err (!%p2833_p11)
}
0x177f   :  { %2096 = dma.vmem_to_hbm [thread:$0]  %s2094_s23, 128, %s3681_s20, [#allocation5]  }
0x1780   :  { %2843 = dma.done.wait [#allocation5], 128  }
0x1781   :  { %2844 = vsyncadd [#allocation5], 4294967168 }
0x1782   :  { %2100 = vsyncpa [#allocation4], 1 }
0x1783   :  { %2101 = vsyncpa [#allocation7], 1 }
0x1784   :  { %2102 = vsyncpa [#allocation10], 1 }
0x1785   :  { %2103 = vsyncpa [#allocation5], 1 }

</bundles_post_ra>
